<compile_context>
chip_gen: v7x
topology: tpu7x:2x2x1
jax: 0.10.0
libtpu: 0.0.40
codegen_flags: <defaults>
</compile_context>

<pallas_src>
import functools

import jax
import jax.numpy as jnp
from jax.experimental import pallas as pl
from jax.experimental.pallas import tpu as pltpu

HIDDEN = 32
NUM_HEADS = 4
HEAD_DIM = HIDDEN // NUM_HEADS
FF_HIDDEN = 64
NUM_LAYERS = 3
LN_EPS = 1e-5
NEG_BIG = -1e30  # finite additive mask value (NaN-safe softmax)

# Packed-parameter layout (stacked over layers):
#   w_in_all : (L, 32, 192) bf16 = [Wq | Wk | Wv | Wo | W1]   (Wq pre-scaled)
#   w2_all   : (L, 64, 32)  bf16
#   vec_all  : (L, 3, 128)  f32
#       row 0: [ln1_g | ln1_b | ln2_g | ln2_b]
#       row 1: [bq | bk | bv | bo]          (bq pre-scaled by 1/sqrt(Dh))
#       row 2: [b1(64) | b2(32) | zeros(32)]


def encoder_kernel(x_ref, mask_ref, w_in_ref, w2_ref, vec_ref, out_ref, *,
                   num_layers, dense_mask):
    bt, S, D = x_ref.shape
    H, Dh = NUM_HEADS, HEAD_DIM
    n = bt * S

    tok = x_ref[...].reshape(n, D)                     # (N, D) f32 token rows

    # Additive attention bias: built ONCE per block, tiled over heads so it
    # adds directly onto the head-batched (H*bt, S, S) score tensor.
    if dense_mask:
        mvals = mask_ref[...].astype(jnp.float32)      # (bt, S, S)
    else:
        mvals = mask_ref[...].reshape(bt, 1, S)        # (bt, 1, S) key padding
    mbias = jnp.concatenate([mvals * jnp.float32(NEG_BIG)] * H, axis=0)

    def layernorm(z, g, b):
        mu = jnp.mean(z, axis=-1, keepdims=True)
        var = jnp.mean((z - mu) ** 2, axis=-1, keepdims=True)  # biased (PyTorch)
        return (z - mu) * jax.lax.rsqrt(var + LN_EPS) * g + b

    for l in range(num_layers):                        # static unroll over layers
        w_in = w_in_ref[l]                             # (32, 192) bf16
        w2 = w2_ref[l]                                 # (64, 32) bf16
        vec = vec_ref[l]                               # (3, 128) f32
        ln1_g, ln1_b = vec[0:1, 0:D], vec[0:1, D:2 * D]
        ln2_g, ln2_b = vec[0:1, 2 * D:3 * D], vec[0:1, 3 * D:4 * D]
        bqkv = vec[1:2, 0:3 * D]                       # (1, 96)
        bo = vec[1:2, 3 * D:4 * D]                     # (1, 32)
        b1 = vec[2:3, 0:FF_HIDDEN]                     # (1, 64)
        b2 = vec[2:3, FF_HIDDEN:FF_HIDDEN + D]         # (1, 32)

        # ---- MultiHead(x, x, x, mask): pre-norm, fused QKV, residual ----
        xn = layernorm(tok, ln1_g, ln1_b)              # norm(Q)=norm(K)=norm(V)
        # single bf16 cast of the whole (N, 96) QKV activation
        qkv = (jnp.dot(xn.astype(jnp.bfloat16), w_in[:, 0:3 * D],
                       preferred_element_type=jnp.float32) + bqkv
               ).astype(jnp.bfloat16)                  # (N, 96)

        # Fold all heads into the leading batch dim: (N, D) -> (H*bt, S, Dh)
        # with batch index = h*bt + b (reshape + axis-0 concat only).
        def split_heads(col0):
            return jnp.concatenate(
                [qkv[:, col0 + h * Dh: col0 + (h + 1) * Dh].reshape(bt, S, Dh)
                 for h in range(H)], axis=0)
        q = split_heads(0)                             # 1/sqrt(Dh) folded in Wq
        k = split_heads(D)
        v = split_heads(2 * D)

        # ONE batched QK^T and ONE batched PV matmul for all heads.
        s = jnp.einsum('bqd,bkd->bqk', q, k,
                       preferred_element_type=jnp.float32) + mbias   # (H*bt,S,S)
        smax = jnp.max(s, axis=-1, keepdims=True)
        e = jnp.exp(s - smax)
        p = e * pl.reciprocal(jnp.sum(e, axis=-1, keepdims=True), approx=True)
        ctx = jnp.einsum('bqk,bkd->bqd', p.astype(jnp.bfloat16), v,
                         preferred_element_type=jnp.float32)         # (H*bt,S,Dh)

        # Merge heads without a lane concat: proj = sum_h ctx_h @ Wo[h*Dh:(h+1)*Dh]
        ctx = ctx.reshape(H, n, Dh).astype(jnp.bfloat16)
        proj = bo
        for h in range(H):
            proj = proj + jnp.dot(ctx[h], w_in[h * Dh:(h + 1) * Dh, 3 * D:4 * D],
                                  preferred_element_type=jnp.float32)
        score = tok + proj                             # residual (dropout = id)

        # ---- FullyConnectedOutput(score): pre-norm MLP, residual ----
        sn = layernorm(score, ln2_g, ln2_b)
        h1 = jnp.maximum(
            jnp.dot(sn.astype(jnp.bfloat16), w_in[:, 4 * D:4 * D + FF_HIDDEN],
                    preferred_element_type=jnp.float32) + b1, 0.0)
        h2 = jnp.dot(h1.astype(jnp.bfloat16), w2,
                     preferred_element_type=jnp.float32) + b2
        tok = score + h2                               # residual (dropout = id)

    out_ref[...] = tok.reshape(bt, S, D)


def encoder_forward(x, mask, packed_params):
    """x: (B, S, 32) f32.  mask: (B, S) / (B, 1, S) key-padding vector or dense
    (B, S, S); float with 1.0 meaning "masked out" (as in masked_fill)."""
    w_in_all, w2_all, vec_all = packed_params
    B, S, D = x.shape
    assert D == HIDDEN
    num_layers = w_in_all.shape[0]

    if mask.ndim == 2:                                  # (B, S) key padding
        mask, dense_mask = mask.reshape(B, 1, S), False
    elif mask.ndim == 3 and mask.shape[1] == 1:         # (B, 1, S) key padding
        dense_mask = False
    else:                                               # (B, S, S) dense fallback
        dense_mask = True
    # dense fallback: store bf16 to halve the (dominant) mask HBM/VMEM stream
    mask = mask.astype(jnp.bfloat16 if dense_mask else jnp.float32)

    # --- sequences per grid step: ~1024 token rows, VMEM-budgeted, <= B ---
    bt = max(1, min(B, max(1, 1024 // S)))

    def est_vmem(btc):                                  # rough bytes for one step
        n = btc * S
        io = 2 * n * D * 4                              # x block + out block
        mb = btc * S * (S * 2 if dense_mask else 4)     # mask block
        act = n * (6 * D + FF_HIDDEN + 2 * D) * 4 + 2 * NUM_HEADS * btc * S * S * 4
        return 2 * (io + mb) + act                      # 2x: double-buffered I/O

    budget = 10 * 1024 * 1024   # fits v5e 16 MiB default scoped VMEM (v6e 32, v7x 64 phys)
    while bt > 1 and est_vmem(bt) > budget:
        bt = max(1, bt // 2)

    steps = -(-B // bt)
    if B >= 2:
        steps = max(steps, 2)      # >= 2 grid steps so both v7x TensorCores get work
    bt = -(-B // steps)            # rebalance; never exceeds B -> minimal padding
    steps = -(-B // bt)
    b_pad = steps * bt

    if b_pad != B:                 # pad < one block; padded rows fully masked
        x = jnp.concatenate([x, jnp.zeros((b_pad - B, S, D), x.dtype)], axis=0)
        mask = jnp.concatenate(
            [mask, jnp.ones((b_pad - B,) + mask.shape[1:], mask.dtype)], axis=0)

    mask_spec = (pl.BlockSpec((bt, S, S), lambda b: (b, 0, 0)) if dense_mask
                 else pl.BlockSpec((bt, 1, S), lambda b: (b, 0, 0)))

    kernel = functools.partial(encoder_kernel, num_layers=num_layers,
                               dense_mask=dense_mask)
    out = pl.pallas_call(
        kernel,
        out_shape=jax.ShapeDtypeStruct((b_pad, S, D), jnp.float32),
        grid_spec=pltpu.PrefetchScalarGridSpec(
            num_scalar_prefetch=0,
            grid=(steps,),
            in_specs=[
                pl.BlockSpec((bt, S, D), lambda b: (b, 0, 0)),
                mask_spec,
                # packed parameter blobs: resident across the whole grid
                pl.BlockSpec(w_in_all.shape, lambda b: (0, 0, 0)),
                pl.BlockSpec(w2_all.shape, lambda b: (0, 0, 0)),
                pl.BlockSpec(vec_all.shape, lambda b: (0, 0, 0)),
            ],
            out_specs=pl.BlockSpec((bt, S, D), lambda b: (b, 0, 0)),
        ),
        compiler_params=pltpu.CompilerParams(
            dimension_semantics=("parallel",)),
    )(x, mask, w_in_all, w2_all, vec_all)
    return out[:B]


def init_encoder_params(key, num_layers=NUM_LAYERS):
    """Deterministic synthetic parameters packed into 3 layer-stacked blobs.
    Linear weights are stored (in, out) so y = x @ W + b.  The attention scale
    1/sqrt(HEAD_DIM) is folded into Wq / bq at packing time (zero kernel cost)."""
    D, FF = HIDDEN, FF_HIDDEN
    attn_scale = 1.0 / (HEAD_DIM ** 0.5)

    def w(k, shape, scale=0.1):
        return (scale * jax.random.normal(k, shape)).astype(jnp.float32)

    w_in_l, w2_l, vec_l = [], [], []
    for _ in range(num_layers):
        key, *ks = jax.random.split(key, 12)
        wq, bq = w(ks[0], (D, D)), w(ks[1], (D,))
        wk, bk = w(ks[2], (D, D)), w(ks[3], (D,))
        wv, bv = w(ks[4], (D, D)), w(ks[5], (D,))
        wo, bo = w(ks[6], (D, D)), w(ks[7], (D,))
        w1, b1 = w(ks[8], (D, FF)), w(ks[9], (FF,))
        w2, b2 = w(ks[10], (FF, D)), jnp.zeros((D,), jnp.float32)
        ln1_g, ln1_b = jnp.ones((D,), jnp.float32), jnp.zeros((D,), jnp.float32)
        ln2_g, ln2_b = jnp.ones((D,), jnp.float32), jnp.zeros((D,), jnp.float32)

        wq, bq = wq * attn_scale, bq * attn_scale        # fold 1/sqrt(Dh) into Q

        w_in_l.append(jnp.concatenate([wq, wk, wv, wo, w1], axis=1))   # (32,192)
        w2_l.append(w2)                                                # (64, 32)
        vec_l.append(jnp.stack([
            jnp.concatenate([ln1_g, ln1_b, ln2_g, ln2_b]),             # (128,)
            jnp.concatenate([bq, bk, bv, bo]),                         # (128,)
            jnp.concatenate([b1, b2, jnp.zeros((D,), jnp.float32)]),   # (128,)
        ]))                                                            # (3, 128)

    w_in_all = jnp.stack(w_in_l).astype(jnp.bfloat16)   # (L, 32, 192)
    w2_all = jnp.stack(w2_l).astype(jnp.bfloat16)       # (L, 64, 32)
    vec_all = jnp.stack(vec_l).astype(jnp.float32)      # (L, 3, 128)
    return w_in_all, w2_all, vec_all


if __name__ == "__main__":
    B, S = 2, 8
    key = jax.random.PRNGKey(0)
    k_x, k_p = jax.random.split(key)

    x = jax.random.normal(k_x, (B, S, HIDDEN), dtype=jnp.float32)

    # Key-padding mask: 1.0 marks padded key positions (masked out).
    lengths = jnp.array([S, S - 2])
    key_mask = (jnp.arange(S)[None, :] >= lengths[:, None]).astype(jnp.float32)  # (B, S)

    params = init_encoder_params(k_p)

    out = encoder_forward(x, key_mask, params)
    out = jax.block_until_ready(out)
    assert out.shape == (B, S, HIDDEN) and out.dtype == jnp.float32
    assert bool(jnp.isfinite(out).all())
    print("KERNEL_OK")
</pallas_src>

<mosaic_0001>
module attributes {stable_mosaic.version = 11 : i64} {
  func.func @encoder_kernel(%arg0: i32, %arg1: memref<1x8x32xf32, #tpu.memory_space<vmem>>, %arg2: memref<1x1x8xf32, #tpu.memory_space<vmem>>, %arg3: memref<3x32x192xbf16, #tpu.memory_space<vmem>>, %arg4: memref<3x64x32xbf16, #tpu.memory_space<vmem>>, %arg5: memref<3x3x128xf32, #tpu.memory_space<vmem>>, %arg6: memref<1x8x32xf32, #tpu.memory_space<vmem>>) attributes {dimension_semantics = [#tpu.dimension_semantics<parallel>], iteration_bounds = array<i64: 2>, scalar_prefetch = 0 : i64, scratch_operands = 0 : i64, tpu.core_type = #tpu.core_type<tc>, window_params = [{transform_indices = @transform_0, window_bounds = array<i64: 1, 8, 32>}, {transform_indices = @transform_1, window_bounds = array<i64: 1, 1, 8>}, {pipeline_mode = #tpu.pipeline_mode<synchronous>, transform_indices = @transform_2, window_bounds = array<i64: 3, 32, 192>}, {pipeline_mode = #tpu.pipeline_mode<synchronous>, transform_indices = @transform_3, window_bounds = array<i64: 3, 64, 32>}, {pipeline_mode = #tpu.pipeline_mode<synchronous>, transform_indices = @transform_4, window_bounds = array<i64: 3, 3, 128>}, {transform_indices = @transform_5, window_bounds = array<i64: 1, 8, 32>}]} {
    %c0 = arith.constant 0 : index
    %c0_0 = arith.constant 0 : index
    %c0_1 = arith.constant 0 : index
    %0 = vector.load %arg1[%c0, %c0_0, %c0_1] : memref<1x8x32xf32, #tpu.memory_space<vmem>>, vector<1x8x32xf32>
    %1 = vector.shape_cast %0 : vector<1x8x32xf32> to vector<8x32xf32>
    %c0_2 = arith.constant 0 : index
    %c0_3 = arith.constant 0 : index
    %c0_4 = arith.constant 0 : index
    %2 = vector.load %arg2[%c0_2, %c0_3, %c0_4] : memref<1x1x8xf32, #tpu.memory_space<vmem>>, vector<1x1x8xf32>
    %cst = arith.constant -1.000000e+30 : f32
    %3 = vector.broadcast %cst : f32 to vector<1x1x8xf32>
    %4 = arith.mulf %2, %3 : vector<1x1x8xf32>
    %5 = tpu.concatenate %4, %4, %4, %4 in 0 : vector<1x1x8xf32>, vector<1x1x8xf32>, vector<1x1x8xf32>, vector<1x1x8xf32> -> vector<4x1x8xf32>
    %c0_5 = arith.constant 0 : index
    %c0_6 = arith.constant 0 : index
    %c0_7 = arith.constant 0 : index
    %6 = vector.load %arg3[%c0_5, %c0_6, %c0_7] : memref<3x32x192xbf16, #tpu.memory_space<vmem>>, vector<1x32x192xbf16>
    %7 = vector.shape_cast %6 : vector<1x32x192xbf16> to vector<32x192xbf16>
    %c0_8 = arith.constant 0 : index
    %c0_9 = arith.constant 0 : index
    %c0_10 = arith.constant 0 : index
    %8 = vector.load %arg4[%c0_8, %c0_9, %c0_10] : memref<3x64x32xbf16, #tpu.memory_space<vmem>>, vector<1x64x32xbf16>
    %9 = vector.shape_cast %8 : vector<1x64x32xbf16> to vector<64x32xbf16>
    %c0_11 = arith.constant 0 : index
    %c0_12 = arith.constant 0 : index
    %c0_13 = arith.constant 0 : index
    %10 = vector.load %arg5[%c0_11, %c0_12, %c0_13] : memref<3x3x128xf32, #tpu.memory_space<vmem>>, vector<1x3x128xf32>
    %11 = vector.shape_cast %10 : vector<1x3x128xf32> to vector<3x128xf32>
    %12 = vector.extract_strided_slice %11 {offsets = [0, 0], sizes = [1, 32], strides = [1, 1]} : vector<3x128xf32> to vector<1x32xf32>
    %13 = vector.extract_strided_slice %11 {offsets = [0, 32], sizes = [1, 32], strides = [1, 1]} : vector<3x128xf32> to vector<1x32xf32>
    %14 = vector.extract_strided_slice %11 {offsets = [0, 64], sizes = [1, 32], strides = [1, 1]} : vector<3x128xf32> to vector<1x32xf32>
    %15 = vector.extract_strided_slice %11 {offsets = [0, 96], sizes = [1, 32], strides = [1, 1]} : vector<3x128xf32> to vector<1x32xf32>
    %16 = vector.extract_strided_slice %11 {offsets = [1, 0], sizes = [1, 96], strides = [1, 1]} : vector<3x128xf32> to vector<1x96xf32>
    %17 = vector.extract_strided_slice %11 {offsets = [1, 96], sizes = [1, 32], strides = [1, 1]} : vector<3x128xf32> to vector<1x32xf32>
    %18 = vector.extract_strided_slice %11 {offsets = [2, 0], sizes = [1, 64], strides = [1, 1]} : vector<3x128xf32> to vector<1x64xf32>
    %19 = vector.extract_strided_slice %11 {offsets = [2, 64], sizes = [1, 32], strides = [1, 1]} : vector<3x128xf32> to vector<1x32xf32>
    %cst_14 = arith.constant dense<0.000000e+00> : vector<8xf32>
    %20 = vector.multi_reduction <add>, %1, %cst_14 [1] : vector<8x32xf32> to vector<8xf32>
    %21 = vector.shape_cast %20 : vector<8xf32> to vector<8x1xf32>
    %cst_15 = arith.constant 3.200000e+01 : f32
    %22 = vector.broadcast %cst_15 : f32 to vector<8x1xf32>
    %23 = arith.divf %21, %22 : vector<8x1xf32>
    %24 = vector.broadcast %23 : vector<8x1xf32> to vector<8x32xf32>
    %25 = arith.subf %1, %24 : vector<8x32xf32>
    %26 = arith.mulf %25, %25 : vector<8x32xf32>
    %cst_16 = arith.constant dense<0.000000e+00> : vector<8xf32>
    %27 = vector.multi_reduction <add>, %26, %cst_16 [1] : vector<8x32xf32> to vector<8xf32>
    %28 = vector.shape_cast %27 : vector<8xf32> to vector<8x1xf32>
    %cst_17 = arith.constant 3.200000e+01 : f32
    %29 = vector.broadcast %cst_17 : f32 to vector<8x1xf32>
    %30 = arith.divf %28, %29 : vector<8x1xf32>
    %31 = vector.broadcast %23 : vector<8x1xf32> to vector<8x32xf32>
    %32 = arith.subf %1, %31 : vector<8x32xf32>
    %cst_18 = arith.constant 9.99999974E-6 : f32
    %33 = vector.broadcast %cst_18 : f32 to vector<8x1xf32>
    %34 = arith.addf %30, %33 : vector<8x1xf32>
    %35 = math.rsqrt %34 : vector<8x1xf32>
    %36 = vector.broadcast %35 : vector<8x1xf32> to vector<8x32xf32>
    %37 = arith.mulf %32, %36 : vector<8x32xf32>
    %38 = vector.broadcast %12 : vector<1x32xf32> to vector<8x32xf32>
    %39 = arith.mulf %37, %38 : vector<8x32xf32>
    %40 = vector.broadcast %13 : vector<1x32xf32> to vector<8x32xf32>
    %41 = arith.addf %39, %40 : vector<8x32xf32>
    %42 = arith.truncf %41 : vector<8x32xf32> to vector<8x32xbf16>
    %43 = vector.extract_strided_slice %7 {offsets = [0, 0], sizes = [32, 96], strides = [1, 1]} : vector<32x192xbf16> to vector<32x96xbf16>
    %cst_19 = arith.constant dense<0.000000e+00> : vector<8x96xf32>
    %44 = tpu.matmul %42, %43, %cst_19 {dimension_numbers = #tpu.dot_dimension_numbers<[1], [0], [0], [1], [0, 0, 1, 1], [], []>} : vector<8x32xbf16>, vector<32x96xbf16>, vector<8x96xf32> -> vector<8x96xf32>
    %45 = vector.broadcast %16 : vector<1x96xf32> to vector<8x96xf32>
    %46 = arith.addf %44, %45 : vector<8x96xf32>
    %47 = arith.truncf %46 : vector<8x96xf32> to vector<8x96xbf16>
    %48 = vector.extract_strided_slice %47 {offsets = [0, 0], sizes = [8, 8], strides = [1, 1]} : vector<8x96xbf16> to vector<8x8xbf16>
    %49 = vector.shape_cast %48 : vector<8x8xbf16> to vector<1x8x8xbf16>
    %50 = vector.extract_strided_slice %47 {offsets = [0, 8], sizes = [8, 8], strides = [1, 1]} : vector<8x96xbf16> to vector<8x8xbf16>
    %51 = vector.shape_cast %50 : vector<8x8xbf16> to vector<1x8x8xbf16>
    %52 = vector.extract_strided_slice %47 {offsets = [0, 16], sizes = [8, 8], strides = [1, 1]} : vector<8x96xbf16> to vector<8x8xbf16>
    %53 = vector.shape_cast %52 : vector<8x8xbf16> to vector<1x8x8xbf16>
    %54 = vector.extract_strided_slice %47 {offsets = [0, 24], sizes = [8, 8], strides = [1, 1]} : vector<8x96xbf16> to vector<8x8xbf16>
    %55 = vector.shape_cast %54 : vector<8x8xbf16> to vector<1x8x8xbf16>
    %56 = tpu.concatenate %49, %51, %53, %55 in 0 : vector<1x8x8xbf16>, vector<1x8x8xbf16>, vector<1x8x8xbf16>, vector<1x8x8xbf16> -> vector<4x8x8xbf16>
    %57 = vector.extract_strided_slice %47 {offsets = [0, 32], sizes = [8, 8], strides = [1, 1]} : vector<8x96xbf16> to vector<8x8xbf16>
    %58 = vector.shape_cast %57 : vector<8x8xbf16> to vector<1x8x8xbf16>
    %59 = vector.extract_strided_slice %47 {offsets = [0, 40], sizes = [8, 8], strides = [1, 1]} : vector<8x96xbf16> to vector<8x8xbf16>
    %60 = vector.shape_cast %59 : vector<8x8xbf16> to vector<1x8x8xbf16>
    %61 = vector.extract_strided_slice %47 {offsets = [0, 48], sizes = [8, 8], strides = [1, 1]} : vector<8x96xbf16> to vector<8x8xbf16>
    %62 = vector.shape_cast %61 : vector<8x8xbf16> to vector<1x8x8xbf16>
    %63 = vector.extract_strided_slice %47 {offsets = [0, 56], sizes = [8, 8], strides = [1, 1]} : vector<8x96xbf16> to vector<8x8xbf16>
    %64 = vector.shape_cast %63 : vector<8x8xbf16> to vector<1x8x8xbf16>
    %65 = tpu.concatenate %58, %60, %62, %64 in 0 : vector<1x8x8xbf16>, vector<1x8x8xbf16>, vector<1x8x8xbf16>, vector<1x8x8xbf16> -> vector<4x8x8xbf16>
    %66 = vector.extract_strided_slice %47 {offsets = [0, 64], sizes = [8, 8], strides = [1, 1]} : vector<8x96xbf16> to vector<8x8xbf16>
    %67 = vector.shape_cast %66 : vector<8x8xbf16> to vector<1x8x8xbf16>
    %68 = vector.extract_strided_slice %47 {offsets = [0, 72], sizes = [8, 8], strides = [1, 1]} : vector<8x96xbf16> to vector<8x8xbf16>
    %69 = vector.shape_cast %68 : vector<8x8xbf16> to vector<1x8x8xbf16>
    %70 = vector.extract_strided_slice %47 {offsets = [0, 80], sizes = [8, 8], strides = [1, 1]} : vector<8x96xbf16> to vector<8x8xbf16>
    %71 = vector.shape_cast %70 : vector<8x8xbf16> to vector<1x8x8xbf16>
    %72 = vector.extract_strided_slice %47 {offsets = [0, 88], sizes = [8, 8], strides = [1, 1]} : vector<8x96xbf16> to vector<8x8xbf16>
    %73 = vector.shape_cast %72 : vector<8x8xbf16> to vector<1x8x8xbf16>
    %74 = tpu.concatenate %67, %69, %71, %73 in 0 : vector<1x8x8xbf16>, vector<1x8x8xbf16>, vector<1x8x8xbf16>, vector<1x8x8xbf16> -> vector<4x8x8xbf16>
    "tpu.trace_start"() <{level = 10 : i32, message = "bqd,bkd->bqk"}> : () -> ()
    %cst_20 = arith.constant dense<0.000000e+00> : vector<4x8x8xf32>
    %75 = tpu.matmul %56, %65, %cst_20 {dimension_numbers = #tpu.dot_dimension_numbers<[2], [2], [1], [1], [0, 0, 0, 1, 1, 1], [0], [0]>} : vector<4x8x8xbf16>, vector<4x8x8xbf16>, vector<4x8x8xf32> -> vector<4x8x8xf32>
    "tpu.trace_stop"() : () -> ()
    %76 = vector.broadcast %5 : vector<4x1x8xf32> to vector<4x8x8xf32>
    %77 = arith.addf %75, %76 : vector<4x8x8xf32>
    %cst_21 = arith.constant dense<0xFF800000> : vector<4x8xf32>
    %78 = vector.multi_reduction <maximumf>, %77, %cst_21 [2] : vector<4x8x8xf32> to vector<4x8xf32>
    %79 = vector.shape_cast %78 : vector<4x8xf32> to vector<4x8x1xf32>
    %80 = vector.broadcast %79 : vector<4x8x1xf32> to vector<4x8x8xf32>
    %81 = arith.subf %77, %80 : vector<4x8x8xf32>
    %82 = math.exp %81 : vector<4x8x8xf32>
    %cst_22 = arith.constant dense<0.000000e+00> : vector<4x8xf32>
    %83 = vector.multi_reduction <add>, %82, %cst_22 [2] : vector<4x8x8xf32> to vector<4x8xf32>
    %84 = vector.shape_cast %83 : vector<4x8xf32> to vector<4x8x1xf32>
    %85 = tpu.reciprocal %84 {approx = true} : vector<4x8x1xf32> -> vector<4x8x1xf32>
    %86 = vector.broadcast %85 : vector<4x8x1xf32> to vector<4x8x8xf32>
    %87 = arith.mulf %82, %86 : vector<4x8x8xf32>
    %88 = arith.truncf %87 : vector<4x8x8xf32> to vector<4x8x8xbf16>
    "tpu.trace_start"() <{level = 10 : i32, message = "bqk,bkd->bqd"}> : () -> ()
    %cst_23 = arith.constant dense<0.000000e+00> : vector<4x8x8xf32>
    %89 = tpu.matmul %88, %74, %cst_23 {dimension_numbers = #tpu.dot_dimension_numbers<[2], [1], [1], [2], [0, 0, 0, 1, 1, 2], [0], [0]>} : vector<4x8x8xbf16>, vector<4x8x8xbf16>, vector<4x8x8xf32> -> vector<4x8x8xf32>
    "tpu.trace_stop"() : () -> ()
    %90 = arith.truncf %89 : vector<4x8x8xf32> to vector<4x8x8xbf16>
    %91 = vector.extract_strided_slice %90 {offsets = [0, 0, 0], sizes = [1, 8, 8], strides = [1, 1, 1]} : vector<4x8x8xbf16> to vector<1x8x8xbf16>
    %92 = vector.shape_cast %91 : vector<1x8x8xbf16> to vector<8x8xbf16>
    %93 = vector.extract_strided_slice %7 {offsets = [0, 96], sizes = [8, 32], strides = [1, 1]} : vector<32x192xbf16> to vector<8x32xbf16>
    %cst_24 = arith.constant dense<0.000000e+00> : vector<8x32xf32>
    %94 = tpu.matmul %92, %93, %cst_24 {dimension_numbers = #tpu.dot_dimension_numbers<[1], [0], [0], [1], [0, 0, 1, 1], [], []>} : vector<8x8xbf16>, vector<8x32xbf16>, vector<8x32xf32> -> vector<8x32xf32>
    %95 = vector.broadcast %17 : vector<1x32xf32> to vector<8x32xf32>
    %96 = arith.addf %95, %94 : vector<8x32xf32>
    %97 = vector.extract_strided_slice %90 {offsets = [1, 0, 0], sizes = [1, 8, 8], strides = [1, 1, 1]} : vector<4x8x8xbf16> to vector<1x8x8xbf16>
    %98 = vector.shape_cast %97 : vector<1x8x8xbf16> to vector<8x8xbf16>
    %99 = vector.extract_strided_slice %7 {offsets = [8, 96], sizes = [8, 32], strides = [1, 1]} : vector<32x192xbf16> to vector<8x32xbf16>
    %cst_25 = arith.constant dense<0.000000e+00> : vector<8x32xf32>
    %100 = tpu.matmul %98, %99, %cst_25 {dimension_numbers = #tpu.dot_dimension_numbers<[1], [0], [0], [1], [0, 0, 1, 1], [], []>} : vector<8x8xbf16>, vector<8x32xbf16>, vector<8x32xf32> -> vector<8x32xf32>
    %101 = arith.addf %96, %100 : vector<8x32xf32>
    %102 = vector.extract_strided_slice %90 {offsets = [2, 0, 0], sizes = [1, 8, 8], strides = [1, 1, 1]} : vector<4x8x8xbf16> to vector<1x8x8xbf16>
    %103 = vector.shape_cast %102 : vector<1x8x8xbf16> to vector<8x8xbf16>
    %104 = vector.extract_strided_slice %7 {offsets = [16, 96], sizes = [8, 32], strides = [1, 1]} : vector<32x192xbf16> to vector<8x32xbf16>
    %cst_26 = arith.constant dense<0.000000e+00> : vector<8x32xf32>
    %105 = tpu.matmul %103, %104, %cst_26 {dimension_numbers = #tpu.dot_dimension_numbers<[1], [0], [0], [1], [0, 0, 1, 1], [], []>} : vector<8x8xbf16>, vector<8x32xbf16>, vector<8x32xf32> -> vector<8x32xf32>
    %106 = arith.addf %101, %105 : vector<8x32xf32>
    %107 = vector.extract_strided_slice %90 {offsets = [3, 0, 0], sizes = [1, 8, 8], strides = [1, 1, 1]} : vector<4x8x8xbf16> to vector<1x8x8xbf16>
    %108 = vector.shape_cast %107 : vector<1x8x8xbf16> to vector<8x8xbf16>
    %109 = vector.extract_strided_slice %7 {offsets = [24, 96], sizes = [8, 32], strides = [1, 1]} : vector<32x192xbf16> to vector<8x32xbf16>
    %cst_27 = arith.constant dense<0.000000e+00> : vector<8x32xf32>
    %110 = tpu.matmul %108, %109, %cst_27 {dimension_numbers = #tpu.dot_dimension_numbers<[1], [0], [0], [1], [0, 0, 1, 1], [], []>} : vector<8x8xbf16>, vector<8x32xbf16>, vector<8x32xf32> -> vector<8x32xf32>
    %111 = arith.addf %106, %110 : vector<8x32xf32>
    %112 = arith.addf %1, %111 : vector<8x32xf32>
    %cst_28 = arith.constant dense<0.000000e+00> : vector<8xf32>
    %113 = vector.multi_reduction <add>, %112, %cst_28 [1] : vector<8x32xf32> to vector<8xf32>
    %114 = vector.shape_cast %113 : vector<8xf32> to vector<8x1xf32>
    %cst_29 = arith.constant 3.200000e+01 : f32
    %115 = vector.broadcast %cst_29 : f32 to vector<8x1xf32>
    %116 = arith.divf %114, %115 : vector<8x1xf32>
    %117 = vector.broadcast %116 : vector<8x1xf32> to vector<8x32xf32>
    %118 = arith.subf %112, %117 : vector<8x32xf32>
    %119 = arith.mulf %118, %118 : vector<8x32xf32>
    %cst_30 = arith.constant dense<0.000000e+00> : vector<8xf32>
    %120 = vector.multi_reduction <add>, %119, %cst_30 [1] : vector<8x32xf32> to vector<8xf32>
    %121 = vector.shape_cast %120 : vector<8xf32> to vector<8x1xf32>
    %cst_31 = arith.constant 3.200000e+01 : f32
    %122 = vector.broadcast %cst_31 : f32 to vector<8x1xf32>
    %123 = arith.divf %121, %122 : vector<8x1xf32>
    %124 = vector.broadcast %116 : vector<8x1xf32> to vector<8x32xf32>
    %125 = arith.subf %112, %124 : vector<8x32xf32>
    %cst_32 = arith.constant 9.99999974E-6 : f32
    %126 = vector.broadcast %cst_32 : f32 to vector<8x1xf32>
    %127 = arith.addf %123, %126 : vector<8x1xf32>
    %128 = math.rsqrt %127 : vector<8x1xf32>
    %129 = vector.broadcast %128 : vector<8x1xf32> to vector<8x32xf32>
    %130 = arith.mulf %125, %129 : vector<8x32xf32>
    %131 = vector.broadcast %14 : vector<1x32xf32> to vector<8x32xf32>
    %132 = arith.mulf %130, %131 : vector<8x32xf32>
    %133 = vector.broadcast %15 : vector<1x32xf32> to vector<8x32xf32>
    %134 = arith.addf %132, %133 : vector<8x32xf32>
    %135 = arith.truncf %134 : vector<8x32xf32> to vector<8x32xbf16>
    %136 = vector.extract_strided_slice %7 {offsets = [0, 128], sizes = [32, 64], strides = [1, 1]} : vector<32x192xbf16> to vector<32x64xbf16>
    %cst_33 = arith.constant dense<0.000000e+00> : vector<8x64xf32>
    %137 = tpu.matmul %135, %136, %cst_33 {dimension_numbers = #tpu.dot_dimension_numbers<[1], [0], [0], [1], [0, 0, 1, 1], [], []>} : vector<8x32xbf16>, vector<32x64xbf16>, vector<8x64xf32> -> vector<8x64xf32>
    %138 = vector.broadcast %18 : vector<1x64xf32> to vector<8x64xf32>
    %139 = arith.addf %137, %138 : vector<8x64xf32>
    %cst_34 = arith.constant 0.000000e+00 : f32
    %140 = vector.broadcast %cst_34 : f32 to vector<8x64xf32>
    %141 = arith.maximumf %139, %140 : vector<8x64xf32>
    %142 = arith.truncf %141 : vector<8x64xf32> to vector<8x64xbf16>
    %cst_35 = arith.constant dense<0.000000e+00> : vector<8x32xf32>
    %143 = tpu.matmul %142, %9, %cst_35 {dimension_numbers = #tpu.dot_dimension_numbers<[1], [0], [0], [1], [0, 0, 1, 1], [], []>} : vector<8x64xbf16>, vector<64x32xbf16>, vector<8x32xf32> -> vector<8x32xf32>
    %144 = vector.broadcast %19 : vector<1x32xf32> to vector<8x32xf32>
    %145 = arith.addf %143, %144 : vector<8x32xf32>
    %146 = arith.addf %112, %145 : vector<8x32xf32>
    %c1 = arith.constant 1 : index
    %c0_36 = arith.constant 0 : index
    %c0_37 = arith.constant 0 : index
    %147 = vector.load %arg3[%c1, %c0_36, %c0_37] : memref<3x32x192xbf16, #tpu.memory_space<vmem>>, vector<1x32x192xbf16>
    %148 = vector.shape_cast %147 : vector<1x32x192xbf16> to vector<32x192xbf16>
    %c1_38 = arith.constant 1 : index
    %c0_39 = arith.constant 0 : index
    %c0_40 = arith.constant 0 : index
    %149 = vector.load %arg4[%c1_38, %c0_39, %c0_40] : memref<3x64x32xbf16, #tpu.memory_space<vmem>>, vector<1x64x32xbf16>
    %150 = vector.shape_cast %149 : vector<1x64x32xbf16> to vector<64x32xbf16>
    %c1_41 = arith.constant 1 : index
    %c0_42 = arith.constant 0 : index
    %c0_43 = arith.constant 0 : index
    %151 = vector.load %arg5[%c1_41, %c0_42, %c0_43] : memref<3x3x128xf32, #tpu.memory_space<vmem>>, vector<1x3x128xf32>
    %152 = vector.shape_cast %151 : vector<1x3x128xf32> to vector<3x128xf32>
    %153 = vector.extract_strided_slice %152 {offsets = [0, 0], sizes = [1, 32], strides = [1, 1]} : vector<3x128xf32> to vector<1x32xf32>
    %154 = vector.extract_strided_slice %152 {offsets = [0, 32], sizes = [1, 32], strides = [1, 1]} : vector<3x128xf32> to vector<1x32xf32>
    %155 = vector.extract_strided_slice %152 {offsets = [0, 64], sizes = [1, 32], strides = [1, 1]} : vector<3x128xf32> to vector<1x32xf32>
    %156 = vector.extract_strided_slice %152 {offsets = [0, 96], sizes = [1, 32], strides = [1, 1]} : vector<3x128xf32> to vector<1x32xf32>
    %157 = vector.extract_strided_slice %152 {offsets = [1, 0], sizes = [1, 96], strides = [1, 1]} : vector<3x128xf32> to vector<1x96xf32>
    %158 = vector.extract_strided_slice %152 {offsets = [1, 96], sizes = [1, 32], strides = [1, 1]} : vector<3x128xf32> to vector<1x32xf32>
    %159 = vector.extract_strided_slice %152 {offsets = [2, 0], sizes = [1, 64], strides = [1, 1]} : vector<3x128xf32> to vector<1x64xf32>
    %160 = vector.extract_strided_slice %152 {offsets = [2, 64], sizes = [1, 32], strides = [1, 1]} : vector<3x128xf32> to vector<1x32xf32>
    %cst_44 = arith.constant dense<0.000000e+00> : vector<8xf32>
    %161 = vector.multi_reduction <add>, %146, %cst_44 [1] : vector<8x32xf32> to vector<8xf32>
    %162 = vector.shape_cast %161 : vector<8xf32> to vector<8x1xf32>
    %cst_45 = arith.constant 3.200000e+01 : f32
    %163 = vector.broadcast %cst_45 : f32 to vector<8x1xf32>
    %164 = arith.divf %162, %163 : vector<8x1xf32>
    %165 = vector.broadcast %164 : vector<8x1xf32> to vector<8x32xf32>
    %166 = arith.subf %146, %165 : vector<8x32xf32>
    %167 = arith.mulf %166, %166 : vector<8x32xf32>
    %cst_46 = arith.constant dense<0.000000e+00> : vector<8xf32>
    %168 = vector.multi_reduction <add>, %167, %cst_46 [1] : vector<8x32xf32> to vector<8xf32>
    %169 = vector.shape_cast %168 : vector<8xf32> to vector<8x1xf32>
    %cst_47 = arith.constant 3.200000e+01 : f32
    %170 = vector.broadcast %cst_47 : f32 to vector<8x1xf32>
    %171 = arith.divf %169, %170 : vector<8x1xf32>
    %172 = vector.broadcast %164 : vector<8x1xf32> to vector<8x32xf32>
    %173 = arith.subf %146, %172 : vector<8x32xf32>
    %cst_48 = arith.constant 9.99999974E-6 : f32
    %174 = vector.broadcast %cst_48 : f32 to vector<8x1xf32>
    %175 = arith.addf %171, %174 : vector<8x1xf32>
    %176 = math.rsqrt %175 : vector<8x1xf32>
    %177 = vector.broadcast %176 : vector<8x1xf32> to vector<8x32xf32>
    %178 = arith.mulf %173, %177 : vector<8x32xf32>
    %179 = vector.broadcast %153 : vector<1x32xf32> to vector<8x32xf32>
    %180 = arith.mulf %178, %179 : vector<8x32xf32>
    %181 = vector.broadcast %154 : vector<1x32xf32> to vector<8x32xf32>
    %182 = arith.addf %180, %181 : vector<8x32xf32>
    %183 = arith.truncf %182 : vector<8x32xf32> to vector<8x32xbf16>
    %184 = vector.extract_strided_slice %148 {offsets = [0, 0], sizes = [32, 96], strides = [1, 1]} : vector<32x192xbf16> to vector<32x96xbf16>
    %cst_49 = arith.constant dense<0.000000e+00> : vector<8x96xf32>
    %185 = tpu.matmul %183, %184, %cst_49 {dimension_numbers = #tpu.dot_dimension_numbers<[1], [0], [0], [1], [0, 0, 1, 1], [], []>} : vector<8x32xbf16>, vector<32x96xbf16>, vector<8x96xf32> -> vector<8x96xf32>
    %186 = vector.broadcast %157 : vector<1x96xf32> to vector<8x96xf32>
    %187 = arith.addf %185, %186 : vector<8x96xf32>
    %188 = arith.truncf %187 : vector<8x96xf32> to vector<8x96xbf16>
    %189 = vector.extract_strided_slice %188 {offsets = [0, 0], sizes = [8, 8], strides = [1, 1]} : vector<8x96xbf16> to vector<8x8xbf16>
    %190 = vector.shape_cast %189 : vector<8x8xbf16> to vector<1x8x8xbf16>
    %191 = vector.extract_strided_slice %188 {offsets = [0, 8], sizes = [8, 8], strides = [1, 1]} : vector<8x96xbf16> to vector<8x8xbf16>
    %192 = vector.shape_cast %191 : vector<8x8xbf16> to vector<1x8x8xbf16>
    %193 = vector.extract_strided_slice %188 {offsets = [0, 16], sizes = [8, 8], strides = [1, 1]} : vector<8x96xbf16> to vector<8x8xbf16>
    %194 = vector.shape_cast %193 : vector<8x8xbf16> to vector<1x8x8xbf16>
    %195 = vector.extract_strided_slice %188 {offsets = [0, 24], sizes = [8, 8], strides = [1, 1]} : vector<8x96xbf16> to vector<8x8xbf16>
    %196 = vector.shape_cast %195 : vector<8x8xbf16> to vector<1x8x8xbf16>
    %197 = tpu.concatenate %190, %192, %194, %196 in 0 : vector<1x8x8xbf16>, vector<1x8x8xbf16>, vector<1x8x8xbf16>, vector<1x8x8xbf16> -> vector<4x8x8xbf16>
    %198 = vector.extract_strided_slice %188 {offsets = [0, 32], sizes = [8, 8], strides = [1, 1]} : vector<8x96xbf16> to vector<8x8xbf16>
    %199 = vector.shape_cast %198 : vector<8x8xbf16> to vector<1x8x8xbf16>
    %200 = vector.extract_strided_slice %188 {offsets = [0, 40], sizes = [8, 8], strides = [1, 1]} : vector<8x96xbf16> to vector<8x8xbf16>
    %201 = vector.shape_cast %200 : vector<8x8xbf16> to vector<1x8x8xbf16>
    %202 = vector.extract_strided_slice %188 {offsets = [0, 48], sizes = [8, 8], strides = [1, 1]} : vector<8x96xbf16> to vector<8x8xbf16>
    %203 = vector.shape_cast %202 : vector<8x8xbf16> to vector<1x8x8xbf16>
    %204 = vector.extract_strided_slice %188 {offsets = [0, 56], sizes = [8, 8], strides = [1, 1]} : vector<8x96xbf16> to vector<8x8xbf16>
    %205 = vector.shape_cast %204 : vector<8x8xbf16> to vector<1x8x8xbf16>
    %206 = tpu.concatenate %199, %201, %203, %205 in 0 : vector<1x8x8xbf16>, vector<1x8x8xbf16>, vector<1x8x8xbf16>, vector<1x8x8xbf16> -> vector<4x8x8xbf16>
    %207 = vector.extract_strided_slice %188 {offsets = [0, 64], sizes = [8, 8], strides = [1, 1]} : vector<8x96xbf16> to vector<8x8xbf16>
    %208 = vector.shape_cast %207 : vector<8x8xbf16> to vector<1x8x8xbf16>
    %209 = vector.extract_strided_slice %188 {offsets = [0, 72], sizes = [8, 8], strides = [1, 1]} : vector<8x96xbf16> to vector<8x8xbf16>
    %210 = vector.shape_cast %209 : vector<8x8xbf16> to vector<1x8x8xbf16>
    %211 = vector.extract_strided_slice %188 {offsets = [0, 80], sizes = [8, 8], strides = [1, 1]} : vector<8x96xbf16> to vector<8x8xbf16>
    %212 = vector.shape_cast %211 : vector<8x8xbf16> to vector<1x8x8xbf16>
    %213 = vector.extract_strided_slice %188 {offsets = [0, 88], sizes = [8, 8], strides = [1, 1]} : vector<8x96xbf16> to vector<8x8xbf16>
    %214 = vector.shape_cast %213 : vector<8x8xbf16> to vector<1x8x8xbf16>
    %215 = tpu.concatenate %208, %210, %212, %214 in 0 : vector<1x8x8xbf16>, vector<1x8x8xbf16>, vector<1x8x8xbf16>, vector<1x8x8xbf16> -> vector<4x8x8xbf16>
    "tpu.trace_start"() <{level = 10 : i32, message = "bqd,bkd->bqk"}> : () -> ()
    %cst_50 = arith.constant dense<0.000000e+00> : vector<4x8x8xf32>
    %216 = tpu.matmul %197, %206, %cst_50 {dimension_numbers = #tpu.dot_dimension_numbers<[2], [2], [1], [1], [0, 0, 0, 1, 1, 1], [0], [0]>} : vector<4x8x8xbf16>, vector<4x8x8xbf16>, vector<4x8x8xf32> -> vector<4x8x8xf32>
    "tpu.trace_stop"() : () -> ()
    %217 = vector.broadcast %5 : vector<4x1x8xf32> to vector<4x8x8xf32>
    %218 = arith.addf %216, %217 : vector<4x8x8xf32>
    %cst_51 = arith.constant dense<0xFF800000> : vector<4x8xf32>
    %219 = vector.multi_reduction <maximumf>, %218, %cst_51 [2] : vector<4x8x8xf32> to vector<4x8xf32>
    %220 = vector.shape_cast %219 : vector<4x8xf32> to vector<4x8x1xf32>
    %221 = vector.broadcast %220 : vector<4x8x1xf32> to vector<4x8x8xf32>
    %222 = arith.subf %218, %221 : vector<4x8x8xf32>
    %223 = math.exp %222 : vector<4x8x8xf32>
    %cst_52 = arith.constant dense<0.000000e+00> : vector<4x8xf32>
    %224 = vector.multi_reduction <add>, %223, %cst_52 [2] : vector<4x8x8xf32> to vector<4x8xf32>
    %225 = vector.shape_cast %224 : vector<4x8xf32> to vector<4x8x1xf32>
    %226 = tpu.reciprocal %225 {approx = true} : vector<4x8x1xf32> -> vector<4x8x1xf32>
    %227 = vector.broadcast %226 : vector<4x8x1xf32> to vector<4x8x8xf32>
    %228 = arith.mulf %223, %227 : vector<4x8x8xf32>
    %229 = arith.truncf %228 : vector<4x8x8xf32> to vector<4x8x8xbf16>
    "tpu.trace_start"() <{level = 10 : i32, message = "bqk,bkd->bqd"}> : () -> ()
    %cst_53 = arith.constant dense<0.000000e+00> : vector<4x8x8xf32>
    %230 = tpu.matmul %229, %215, %cst_53 {dimension_numbers = #tpu.dot_dimension_numbers<[2], [1], [1], [2], [0, 0, 0, 1, 1, 2], [0], [0]>} : vector<4x8x8xbf16>, vector<4x8x8xbf16>, vector<4x8x8xf32> -> vector<4x8x8xf32>
    "tpu.trace_stop"() : () -> ()
    %231 = arith.truncf %230 : vector<4x8x8xf32> to vector<4x8x8xbf16>
    %232 = vector.extract_strided_slice %231 {offsets = [0, 0, 0], sizes = [1, 8, 8], strides = [1, 1, 1]} : vector<4x8x8xbf16> to vector<1x8x8xbf16>
    %233 = vector.shape_cast %232 : vector<1x8x8xbf16> to vector<8x8xbf16>
    %234 = vector.extract_strided_slice %148 {offsets = [0, 96], sizes = [8, 32], strides = [1, 1]} : vector<32x192xbf16> to vector<8x32xbf16>
    %cst_54 = arith.constant dense<0.000000e+00> : vector<8x32xf32>
    %235 = tpu.matmul %233, %234, %cst_54 {dimension_numbers = #tpu.dot_dimension_numbers<[1], [0], [0], [1], [0, 0, 1, 1], [], []>} : vector<8x8xbf16>, vector<8x32xbf16>, vector<8x32xf32> -> vector<8x32xf32>
    %236 = vector.broadcast %158 : vector<1x32xf32> to vector<8x32xf32>
    %237 = arith.addf %236, %235 : vector<8x32xf32>
    %238 = vector.extract_strided_slice %231 {offsets = [1, 0, 0], sizes = [1, 8, 8], strides = [1, 1, 1]} : vector<4x8x8xbf16> to vector<1x8x8xbf16>
    %239 = vector.shape_cast %238 : vector<1x8x8xbf16> to vector<8x8xbf16>
    %240 = vector.extract_strided_slice %148 {offsets = [8, 96], sizes = [8, 32], strides = [1, 1]} : vector<32x192xbf16> to vector<8x32xbf16>
    %cst_55 = arith.constant dense<0.000000e+00> : vector<8x32xf32>
    %241 = tpu.matmul %239, %240, %cst_55 {dimension_numbers = #tpu.dot_dimension_numbers<[1], [0], [0], [1], [0, 0, 1, 1], [], []>} : vector<8x8xbf16>, vector<8x32xbf16>, vector<8x32xf32> -> vector<8x32xf32>
    %242 = arith.addf %237, %241 : vector<8x32xf32>
    %243 = vector.extract_strided_slice %231 {offsets = [2, 0, 0], sizes = [1, 8, 8], strides = [1, 1, 1]} : vector<4x8x8xbf16> to vector<1x8x8xbf16>
    %244 = vector.shape_cast %243 : vector<1x8x8xbf16> to vector<8x8xbf16>
    %245 = vector.extract_strided_slice %148 {offsets = [16, 96], sizes = [8, 32], strides = [1, 1]} : vector<32x192xbf16> to vector<8x32xbf16>
    %cst_56 = arith.constant dense<0.000000e+00> : vector<8x32xf32>
    %246 = tpu.matmul %244, %245, %cst_56 {dimension_numbers = #tpu.dot_dimension_numbers<[1], [0], [0], [1], [0, 0, 1, 1], [], []>} : vector<8x8xbf16>, vector<8x32xbf16>, vector<8x32xf32> -> vector<8x32xf32>
    %247 = arith.addf %242, %246 : vector<8x32xf32>
    %248 = vector.extract_strided_slice %231 {offsets = [3, 0, 0], sizes = [1, 8, 8], strides = [1, 1, 1]} : vector<4x8x8xbf16> to vector<1x8x8xbf16>
    %249 = vector.shape_cast %248 : vector<1x8x8xbf16> to vector<8x8xbf16>
    %250 = vector.extract_strided_slice %148 {offsets = [24, 96], sizes = [8, 32], strides = [1, 1]} : vector<32x192xbf16> to vector<8x32xbf16>
    %cst_57 = arith.constant dense<0.000000e+00> : vector<8x32xf32>
    %251 = tpu.matmul %249, %250, %cst_57 {dimension_numbers = #tpu.dot_dimension_numbers<[1], [0], [0], [1], [0, 0, 1, 1], [], []>} : vector<8x8xbf16>, vector<8x32xbf16>, vector<8x32xf32> -> vector<8x32xf32>
    %252 = arith.addf %247, %251 : vector<8x32xf32>
    %253 = arith.addf %146, %252 : vector<8x32xf32>
    %cst_58 = arith.constant dense<0.000000e+00> : vector<8xf32>
    %254 = vector.multi_reduction <add>, %253, %cst_58 [1] : vector<8x32xf32> to vector<8xf32>
    %255 = vector.shape_cast %254 : vector<8xf32> to vector<8x1xf32>
    %cst_59 = arith.constant 3.200000e+01 : f32
    %256 = vector.broadcast %cst_59 : f32 to vector<8x1xf32>
    %257 = arith.divf %255, %256 : vector<8x1xf32>
    %258 = vector.broadcast %257 : vector<8x1xf32> to vector<8x32xf32>
    %259 = arith.subf %253, %258 : vector<8x32xf32>
    %260 = arith.mulf %259, %259 : vector<8x32xf32>
    %cst_60 = arith.constant dense<0.000000e+00> : vector<8xf32>
    %261 = vector.multi_reduction <add>, %260, %cst_60 [1] : vector<8x32xf32> to vector<8xf32>
    %262 = vector.shape_cast %261 : vector<8xf32> to vector<8x1xf32>
    %cst_61 = arith.constant 3.200000e+01 : f32
    %263 = vector.broadcast %cst_61 : f32 to vector<8x1xf32>
    %264 = arith.divf %262, %263 : vector<8x1xf32>
    %265 = vector.broadcast %257 : vector<8x1xf32> to vector<8x32xf32>
    %266 = arith.subf %253, %265 : vector<8x32xf32>
    %cst_62 = arith.constant 9.99999974E-6 : f32
    %267 = vector.broadcast %cst_62 : f32 to vector<8x1xf32>
    %268 = arith.addf %264, %267 : vector<8x1xf32>
    %269 = math.rsqrt %268 : vector<8x1xf32>
    %270 = vector.broadcast %269 : vector<8x1xf32> to vector<8x32xf32>
    %271 = arith.mulf %266, %270 : vector<8x32xf32>
    %272 = vector.broadcast %155 : vector<1x32xf32> to vector<8x32xf32>
    %273 = arith.mulf %271, %272 : vector<8x32xf32>
    %274 = vector.broadcast %156 : vector<1x32xf32> to vector<8x32xf32>
    %275 = arith.addf %273, %274 : vector<8x32xf32>
    %276 = arith.truncf %275 : vector<8x32xf32> to vector<8x32xbf16>
    %277 = vector.extract_strided_slice %148 {offsets = [0, 128], sizes = [32, 64], strides = [1, 1]} : vector<32x192xbf16> to vector<32x64xbf16>
    %cst_63 = arith.constant dense<0.000000e+00> : vector<8x64xf32>
    %278 = tpu.matmul %276, %277, %cst_63 {dimension_numbers = #tpu.dot_dimension_numbers<[1], [0], [0], [1], [0, 0, 1, 1], [], []>} : vector<8x32xbf16>, vector<32x64xbf16>, vector<8x64xf32> -> vector<8x64xf32>
    %279 = vector.broadcast %159 : vector<1x64xf32> to vector<8x64xf32>
    %280 = arith.addf %278, %279 : vector<8x64xf32>
    %cst_64 = arith.constant 0.000000e+00 : f32
    %281 = vector.broadcast %cst_64 : f32 to vector<8x64xf32>
    %282 = arith.maximumf %280, %281 : vector<8x64xf32>
    %283 = arith.truncf %282 : vector<8x64xf32> to vector<8x64xbf16>
    %cst_65 = arith.constant dense<0.000000e+00> : vector<8x32xf32>
    %284 = tpu.matmul %283, %150, %cst_65 {dimension_numbers = #tpu.dot_dimension_numbers<[1], [0], [0], [1], [0, 0, 1, 1], [], []>} : vector<8x64xbf16>, vector<64x32xbf16>, vector<8x32xf32> -> vector<8x32xf32>
    %285 = vector.broadcast %160 : vector<1x32xf32> to vector<8x32xf32>
    %286 = arith.addf %284, %285 : vector<8x32xf32>
    %287 = arith.addf %253, %286 : vector<8x32xf32>
    %c2 = arith.constant 2 : index
    %c0_66 = arith.constant 0 : index
    %c0_67 = arith.constant 0 : index
    %288 = vector.load %arg3[%c2, %c0_66, %c0_67] : memref<3x32x192xbf16, #tpu.memory_space<vmem>>, vector<1x32x192xbf16>
    %289 = vector.shape_cast %288 : vector<1x32x192xbf16> to vector<32x192xbf16>
    %c2_68 = arith.constant 2 : index
    %c0_69 = arith.constant 0 : index
    %c0_70 = arith.constant 0 : index
    %290 = vector.load %arg4[%c2_68, %c0_69, %c0_70] : memref<3x64x32xbf16, #tpu.memory_space<vmem>>, vector<1x64x32xbf16>
    %291 = vector.shape_cast %290 : vector<1x64x32xbf16> to vector<64x32xbf16>
    %c2_71 = arith.constant 2 : index
    %c0_72 = arith.constant 0 : index
    %c0_73 = arith.constant 0 : index
    %292 = vector.load %arg5[%c2_71, %c0_72, %c0_73] : memref<3x3x128xf32, #tpu.memory_space<vmem>>, vector<1x3x128xf32>
    %293 = vector.shape_cast %292 : vector<1x3x128xf32> to vector<3x128xf32>
    %294 = vector.extract_strided_slice %293 {offsets = [0, 0], sizes = [1, 32], strides = [1, 1]} : vector<3x128xf32> to vector<1x32xf32>
    %295 = vector.extract_strided_slice %293 {offsets = [0, 32], sizes = [1, 32], strides = [1, 1]} : vector<3x128xf32> to vector<1x32xf32>
    %296 = vector.extract_strided_slice %293 {offsets = [0, 64], sizes = [1, 32], strides = [1, 1]} : vector<3x128xf32> to vector<1x32xf32>
    %297 = vector.extract_strided_slice %293 {offsets = [0, 96], sizes = [1, 32], strides = [1, 1]} : vector<3x128xf32> to vector<1x32xf32>
    %298 = vector.extract_strided_slice %293 {offsets = [1, 0], sizes = [1, 96], strides = [1, 1]} : vector<3x128xf32> to vector<1x96xf32>
    %299 = vector.extract_strided_slice %293 {offsets = [1, 96], sizes = [1, 32], strides = [1, 1]} : vector<3x128xf32> to vector<1x32xf32>
    %300 = vector.extract_strided_slice %293 {offsets = [2, 0], sizes = [1, 64], strides = [1, 1]} : vector<3x128xf32> to vector<1x64xf32>
    %301 = vector.extract_strided_slice %293 {offsets = [2, 64], sizes = [1, 32], strides = [1, 1]} : vector<3x128xf32> to vector<1x32xf32>
    %cst_74 = arith.constant dense<0.000000e+00> : vector<8xf32>
    %302 = vector.multi_reduction <add>, %287, %cst_74 [1] : vector<8x32xf32> to vector<8xf32>
    %303 = vector.shape_cast %302 : vector<8xf32> to vector<8x1xf32>
    %cst_75 = arith.constant 3.200000e+01 : f32
    %304 = vector.broadcast %cst_75 : f32 to vector<8x1xf32>
    %305 = arith.divf %303, %304 : vector<8x1xf32>
    %306 = vector.broadcast %305 : vector<8x1xf32> to vector<8x32xf32>
    %307 = arith.subf %287, %306 : vector<8x32xf32>
    %308 = arith.mulf %307, %307 : vector<8x32xf32>
    %cst_76 = arith.constant dense<0.000000e+00> : vector<8xf32>
    %309 = vector.multi_reduction <add>, %308, %cst_76 [1] : vector<8x32xf32> to vector<8xf32>
    %310 = vector.shape_cast %309 : vector<8xf32> to vector<8x1xf32>
    %cst_77 = arith.constant 3.200000e+01 : f32
    %311 = vector.broadcast %cst_77 : f32 to vector<8x1xf32>
    %312 = arith.divf %310, %311 : vector<8x1xf32>
    %313 = vector.broadcast %305 : vector<8x1xf32> to vector<8x32xf32>
    %314 = arith.subf %287, %313 : vector<8x32xf32>
    %cst_78 = arith.constant 9.99999974E-6 : f32
    %315 = vector.broadcast %cst_78 : f32 to vector<8x1xf32>
    %316 = arith.addf %312, %315 : vector<8x1xf32>
    %317 = math.rsqrt %316 : vector<8x1xf32>
    %318 = vector.broadcast %317 : vector<8x1xf32> to vector<8x32xf32>
    %319 = arith.mulf %314, %318 : vector<8x32xf32>
    %320 = vector.broadcast %294 : vector<1x32xf32> to vector<8x32xf32>
    %321 = arith.mulf %319, %320 : vector<8x32xf32>
    %322 = vector.broadcast %295 : vector<1x32xf32> to vector<8x32xf32>
    %323 = arith.addf %321, %322 : vector<8x32xf32>
    %324 = arith.truncf %323 : vector<8x32xf32> to vector<8x32xbf16>
    %325 = vector.extract_strided_slice %289 {offsets = [0, 0], sizes = [32, 96], strides = [1, 1]} : vector<32x192xbf16> to vector<32x96xbf16>
    %cst_79 = arith.constant dense<0.000000e+00> : vector<8x96xf32>
    %326 = tpu.matmul %324, %325, %cst_79 {dimension_numbers = #tpu.dot_dimension_numbers<[1], [0], [0], [1], [0, 0, 1, 1], [], []>} : vector<8x32xbf16>, vector<32x96xbf16>, vector<8x96xf32> -> vector<8x96xf32>
    %327 = vector.broadcast %298 : vector<1x96xf32> to vector<8x96xf32>
    %328 = arith.addf %326, %327 : vector<8x96xf32>
    %329 = arith.truncf %328 : vector<8x96xf32> to vector<8x96xbf16>
    %330 = vector.extract_strided_slice %329 {offsets = [0, 0], sizes = [8, 8], strides = [1, 1]} : vector<8x96xbf16> to vector<8x8xbf16>
    %331 = vector.shape_cast %330 : vector<8x8xbf16> to vector<1x8x8xbf16>
    %332 = vector.extract_strided_slice %329 {offsets = [0, 8], sizes = [8, 8], strides = [1, 1]} : vector<8x96xbf16> to vector<8x8xbf16>
    %333 = vector.shape_cast %332 : vector<8x8xbf16> to vector<1x8x8xbf16>
    %334 = vector.extract_strided_slice %329 {offsets = [0, 16], sizes = [8, 8], strides = [1, 1]} : vector<8x96xbf16> to vector<8x8xbf16>
    %335 = vector.shape_cast %334 : vector<8x8xbf16> to vector<1x8x8xbf16>
    %336 = vector.extract_strided_slice %329 {offsets = [0, 24], sizes = [8, 8], strides = [1, 1]} : vector<8x96xbf16> to vector<8x8xbf16>
    %337 = vector.shape_cast %336 : vector<8x8xbf16> to vector<1x8x8xbf16>
    %338 = tpu.concatenate %331, %333, %335, %337 in 0 : vector<1x8x8xbf16>, vector<1x8x8xbf16>, vector<1x8x8xbf16>, vector<1x8x8xbf16> -> vector<4x8x8xbf16>
    %339 = vector.extract_strided_slice %329 {offsets = [0, 32], sizes = [8, 8], strides = [1, 1]} : vector<8x96xbf16> to vector<8x8xbf16>
    %340 = vector.shape_cast %339 : vector<8x8xbf16> to vector<1x8x8xbf16>
    %341 = vector.extract_strided_slice %329 {offsets = [0, 40], sizes = [8, 8], strides = [1, 1]} : vector<8x96xbf16> to vector<8x8xbf16>
    %342 = vector.shape_cast %341 : vector<8x8xbf16> to vector<1x8x8xbf16>
    %343 = vector.extract_strided_slice %329 {offsets = [0, 48], sizes = [8, 8], strides = [1, 1]} : vector<8x96xbf16> to vector<8x8xbf16>
    %344 = vector.shape_cast %343 : vector<8x8xbf16> to vector<1x8x8xbf16>
    %345 = vector.extract_strided_slice %329 {offsets = [0, 56], sizes = [8, 8], strides = [1, 1]} : vector<8x96xbf16> to vector<8x8xbf16>
    %346 = vector.shape_cast %345 : vector<8x8xbf16> to vector<1x8x8xbf16>
    %347 = tpu.concatenate %340, %342, %344, %346 in 0 : vector<1x8x8xbf16>, vector<1x8x8xbf16>, vector<1x8x8xbf16>, vector<1x8x8xbf16> -> vector<4x8x8xbf16>
    %348 = vector.extract_strided_slice %329 {offsets = [0, 64], sizes = [8, 8], strides = [1, 1]} : vector<8x96xbf16> to vector<8x8xbf16>
    %349 = vector.shape_cast %348 : vector<8x8xbf16> to vector<1x8x8xbf16>
    %350 = vector.extract_strided_slice %329 {offsets = [0, 72], sizes = [8, 8], strides = [1, 1]} : vector<8x96xbf16> to vector<8x8xbf16>
    %351 = vector.shape_cast %350 : vector<8x8xbf16> to vector<1x8x8xbf16>
    %352 = vector.extract_strided_slice %329 {offsets = [0, 80], sizes = [8, 8], strides = [1, 1]} : vector<8x96xbf16> to vector<8x8xbf16>
    %353 = vector.shape_cast %352 : vector<8x8xbf16> to vector<1x8x8xbf16>
    %354 = vector.extract_strided_slice %329 {offsets = [0, 88], sizes = [8, 8], strides = [1, 1]} : vector<8x96xbf16> to vector<8x8xbf16>
    %355 = vector.shape_cast %354 : vector<8x8xbf16> to vector<1x8x8xbf16>
    %356 = tpu.concatenate %349, %351, %353, %355 in 0 : vector<1x8x8xbf16>, vector<1x8x8xbf16>, vector<1x8x8xbf16>, vector<1x8x8xbf16> -> vector<4x8x8xbf16>
    "tpu.trace_start"() <{level = 10 : i32, message = "bqd,bkd->bqk"}> : () -> ()
    %cst_80 = arith.constant dense<0.000000e+00> : vector<4x8x8xf32>
    %357 = tpu.matmul %338, %347, %cst_80 {dimension_numbers = #tpu.dot_dimension_numbers<[2], [2], [1], [1], [0, 0, 0, 1, 1, 1], [0], [0]>} : vector<4x8x8xbf16>, vector<4x8x8xbf16>, vector<4x8x8xf32> -> vector<4x8x8xf32>
    "tpu.trace_stop"() : () -> ()
    %358 = vector.broadcast %5 : vector<4x1x8xf32> to vector<4x8x8xf32>
    %359 = arith.addf %357, %358 : vector<4x8x8xf32>
    %cst_81 = arith.constant dense<0xFF800000> : vector<4x8xf32>
    %360 = vector.multi_reduction <maximumf>, %359, %cst_81 [2] : vector<4x8x8xf32> to vector<4x8xf32>
    %361 = vector.shape_cast %360 : vector<4x8xf32> to vector<4x8x1xf32>
    %362 = vector.broadcast %361 : vector<4x8x1xf32> to vector<4x8x8xf32>
    %363 = arith.subf %359, %362 : vector<4x8x8xf32>
    %364 = math.exp %363 : vector<4x8x8xf32>
    %cst_82 = arith.constant dense<0.000000e+00> : vector<4x8xf32>
    %365 = vector.multi_reduction <add>, %364, %cst_82 [2] : vector<4x8x8xf32> to vector<4x8xf32>
    %366 = vector.shape_cast %365 : vector<4x8xf32> to vector<4x8x1xf32>
    %367 = tpu.reciprocal %366 {approx = true} : vector<4x8x1xf32> -> vector<4x8x1xf32>
    %368 = vector.broadcast %367 : vector<4x8x1xf32> to vector<4x8x8xf32>
    %369 = arith.mulf %364, %368 : vector<4x8x8xf32>
    %370 = arith.truncf %369 : vector<4x8x8xf32> to vector<4x8x8xbf16>
    "tpu.trace_start"() <{level = 10 : i32, message = "bqk,bkd->bqd"}> : () -> ()
    %cst_83 = arith.constant dense<0.000000e+00> : vector<4x8x8xf32>
    %371 = tpu.matmul %370, %356, %cst_83 {dimension_numbers = #tpu.dot_dimension_numbers<[2], [1], [1], [2], [0, 0, 0, 1, 1, 2], [0], [0]>} : vector<4x8x8xbf16>, vector<4x8x8xbf16>, vector<4x8x8xf32> -> vector<4x8x8xf32>
    "tpu.trace_stop"() : () -> ()
    %372 = arith.truncf %371 : vector<4x8x8xf32> to vector<4x8x8xbf16>
    %373 = vector.extract_strided_slice %372 {offsets = [0, 0, 0], sizes = [1, 8, 8], strides = [1, 1, 1]} : vector<4x8x8xbf16> to vector<1x8x8xbf16>
    %374 = vector.shape_cast %373 : vector<1x8x8xbf16> to vector<8x8xbf16>
    %375 = vector.extract_strided_slice %289 {offsets = [0, 96], sizes = [8, 32], strides = [1, 1]} : vector<32x192xbf16> to vector<8x32xbf16>
    %cst_84 = arith.constant dense<0.000000e+00> : vector<8x32xf32>
    %376 = tpu.matmul %374, %375, %cst_84 {dimension_numbers = #tpu.dot_dimension_numbers<[1], [0], [0], [1], [0, 0, 1, 1], [], []>} : vector<8x8xbf16>, vector<8x32xbf16>, vector<8x32xf32> -> vector<8x32xf32>
    %377 = vector.broadcast %299 : vector<1x32xf32> to vector<8x32xf32>
    %378 = arith.addf %377, %376 : vector<8x32xf32>
    %379 = vector.extract_strided_slice %372 {offsets = [1, 0, 0], sizes = [1, 8, 8], strides = [1, 1, 1]} : vector<4x8x8xbf16> to vector<1x8x8xbf16>
    %380 = vector.shape_cast %379 : vector<1x8x8xbf16> to vector<8x8xbf16>
    %381 = vector.extract_strided_slice %289 {offsets = [8, 96], sizes = [8, 32], strides = [1, 1]} : vector<32x192xbf16> to vector<8x32xbf16>
    %cst_85 = arith.constant dense<0.000000e+00> : vector<8x32xf32>
    %382 = tpu.matmul %380, %381, %cst_85 {dimension_numbers = #tpu.dot_dimension_numbers<[1], [0], [0], [1], [0, 0, 1, 1], [], []>} : vector<8x8xbf16>, vector<8x32xbf16>, vector<8x32xf32> -> vector<8x32xf32>
    %383 = arith.addf %378, %382 : vector<8x32xf32>
    %384 = vector.extract_strided_slice %372 {offsets = [2, 0, 0], sizes = [1, 8, 8], strides = [1, 1, 1]} : vector<4x8x8xbf16> to vector<1x8x8xbf16>
    %385 = vector.shape_cast %384 : vector<1x8x8xbf16> to vector<8x8xbf16>
    %386 = vector.extract_strided_slice %289 {offsets = [16, 96], sizes = [8, 32], strides = [1, 1]} : vector<32x192xbf16> to vector<8x32xbf16>
    %cst_86 = arith.constant dense<0.000000e+00> : vector<8x32xf32>
    %387 = tpu.matmul %385, %386, %cst_86 {dimension_numbers = #tpu.dot_dimension_numbers<[1], [0], [0], [1], [0, 0, 1, 1], [], []>} : vector<8x8xbf16>, vector<8x32xbf16>, vector<8x32xf32> -> vector<8x32xf32>
    %388 = arith.addf %383, %387 : vector<8x32xf32>
    %389 = vector.extract_strided_slice %372 {offsets = [3, 0, 0], sizes = [1, 8, 8], strides = [1, 1, 1]} : vector<4x8x8xbf16> to vector<1x8x8xbf16>
    %390 = vector.shape_cast %389 : vector<1x8x8xbf16> to vector<8x8xbf16>
    %391 = vector.extract_strided_slice %289 {offsets = [24, 96], sizes = [8, 32], strides = [1, 1]} : vector<32x192xbf16> to vector<8x32xbf16>
    %cst_87 = arith.constant dense<0.000000e+00> : vector<8x32xf32>
    %392 = tpu.matmul %390, %391, %cst_87 {dimension_numbers = #tpu.dot_dimension_numbers<[1], [0], [0], [1], [0, 0, 1, 1], [], []>} : vector<8x8xbf16>, vector<8x32xbf16>, vector<8x32xf32> -> vector<8x32xf32>
    %393 = arith.addf %388, %392 : vector<8x32xf32>
    %394 = arith.addf %287, %393 : vector<8x32xf32>
    %cst_88 = arith.constant dense<0.000000e+00> : vector<8xf32>
    %395 = vector.multi_reduction <add>, %394, %cst_88 [1] : vector<8x32xf32> to vector<8xf32>
    %396 = vector.shape_cast %395 : vector<8xf32> to vector<8x1xf32>
    %cst_89 = arith.constant 3.200000e+01 : f32
    %397 = vector.broadcast %cst_89 : f32 to vector<8x1xf32>
    %398 = arith.divf %396, %397 : vector<8x1xf32>
    %399 = vector.broadcast %398 : vector<8x1xf32> to vector<8x32xf32>
    %400 = arith.subf %394, %399 : vector<8x32xf32>
    %401 = arith.mulf %400, %400 : vector<8x32xf32>
    %cst_90 = arith.constant dense<0.000000e+00> : vector<8xf32>
    %402 = vector.multi_reduction <add>, %401, %cst_90 [1] : vector<8x32xf32> to vector<8xf32>
    %403 = vector.shape_cast %402 : vector<8xf32> to vector<8x1xf32>
    %cst_91 = arith.constant 3.200000e+01 : f32
    %404 = vector.broadcast %cst_91 : f32 to vector<8x1xf32>
    %405 = arith.divf %403, %404 : vector<8x1xf32>
    %406 = vector.broadcast %398 : vector<8x1xf32> to vector<8x32xf32>
    %407 = arith.subf %394, %406 : vector<8x32xf32>
    %cst_92 = arith.constant 9.99999974E-6 : f32
    %408 = vector.broadcast %cst_92 : f32 to vector<8x1xf32>
    %409 = arith.addf %405, %408 : vector<8x1xf32>
    %410 = math.rsqrt %409 : vector<8x1xf32>
    %411 = vector.broadcast %410 : vector<8x1xf32> to vector<8x32xf32>
    %412 = arith.mulf %407, %411 : vector<8x32xf32>
    %413 = vector.broadcast %296 : vector<1x32xf32> to vector<8x32xf32>
    %414 = arith.mulf %412, %413 : vector<8x32xf32>
    %415 = vector.broadcast %297 : vector<1x32xf32> to vector<8x32xf32>
    %416 = arith.addf %414, %415 : vector<8x32xf32>
    %417 = arith.truncf %416 : vector<8x32xf32> to vector<8x32xbf16>
    %418 = vector.extract_strided_slice %289 {offsets = [0, 128], sizes = [32, 64], strides = [1, 1]} : vector<32x192xbf16> to vector<32x64xbf16>
    %cst_93 = arith.constant dense<0.000000e+00> : vector<8x64xf32>
    %419 = tpu.matmul %417, %418, %cst_93 {dimension_numbers = #tpu.dot_dimension_numbers<[1], [0], [0], [1], [0, 0, 1, 1], [], []>} : vector<8x32xbf16>, vector<32x64xbf16>, vector<8x64xf32> -> vector<8x64xf32>
    %420 = vector.broadcast %300 : vector<1x64xf32> to vector<8x64xf32>
    %421 = arith.addf %419, %420 : vector<8x64xf32>
    %cst_94 = arith.constant 0.000000e+00 : f32
    %422 = vector.broadcast %cst_94 : f32 to vector<8x64xf32>
    %423 = arith.maximumf %421, %422 : vector<8x64xf32>
    %424 = arith.truncf %423 : vector<8x64xf32> to vector<8x64xbf16>
    %cst_95 = arith.constant dense<0.000000e+00> : vector<8x32xf32>
    %425 = tpu.matmul %424, %291, %cst_95 {dimension_numbers = #tpu.dot_dimension_numbers<[1], [0], [0], [1], [0, 0, 1, 1], [], []>} : vector<8x64xbf16>, vector<64x32xbf16>, vector<8x32xf32> -> vector<8x32xf32>
    %426 = vector.broadcast %301 : vector<1x32xf32> to vector<8x32xf32>
    %427 = arith.addf %425, %426 : vector<8x32xf32>
    %428 = arith.addf %394, %427 : vector<8x32xf32>
    %429 = vector.shape_cast %428 : vector<8x32xf32> to vector<1x8x32xf32>
    %c0_96 = arith.constant 0 : index
    %c0_97 = arith.constant 0 : index
    %c0_98 = arith.constant 0 : index
    %430 = vector.load %arg6[%c0_96, %c0_97, %c0_98] : memref<1x8x32xf32, #tpu.memory_space<vmem>>, vector<1x8x32xf32>
    tpu.vector_store %arg6[%c0_96, %c0_97, %c0_98], %429 {strides = array<i32>} : memref<1x8x32xf32, #tpu.memory_space<vmem>>, vector<1x8x32xf32>,
    return
  }
  func.func @transform_0(%arg0: i32) -> (i32, i32, i32) {
    %c0_i32 = arith.constant 0 : i32
    %c0_i32_0 = arith.constant 0 : i32
    %c0_i32_1 = arith.constant 0 : i32
    return %arg0, %c0_i32, %c0_i32_0 : i32, i32, i32
  }
  func.func @transform_1(%arg0: i32) -> (i32, i32, i32) {
    %c0_i32 = arith.constant 0 : i32
    %c0_i32_0 = arith.constant 0 : i32
    %c0_i32_1 = arith.constant 0 : i32
    return %arg0, %c0_i32, %c0_i32_0 : i32, i32, i32
  }
  func.func @transform_2(%arg0: i32) -> (i32, i32, i32) {
    %c0_i32 = arith.constant 0 : i32
    %c0_i32_0 = arith.constant 0 : i32
    %c0_i32_1 = arith.constant 0 : i32
    %c0_i32_2 = arith.constant 0 : i32
    return %c0_i32, %c0_i32_0, %c0_i32_1 : i32, i32, i32
  }
  func.func @transform_3(%arg0: i32) -> (i32, i32, i32) {
    %c0_i32 = arith.constant 0 : i32
    %c0_i32_0 = arith.constant 0 : i32
    %c0_i32_1 = arith.constant 0 : i32
    %c0_i32_2 = arith.constant 0 : i32
    return %c0_i32, %c0_i32_0, %c0_i32_1 : i32, i32, i32
  }
  func.func @transform_4(%arg0: i32) -> (i32, i32, i32) {
    %c0_i32 = arith.constant 0 : i32
    %c0_i32_0 = arith.constant 0 : i32
    %c0_i32_1 = arith.constant 0 : i32
    %c0_i32_2 = arith.constant 0 : i32
    return %c0_i32, %c0_i32_0, %c0_i32_1 : i32, i32, i32
  }
  func.func @transform_5(%arg0: i32) -> (i32, i32, i32) {
    %c0_i32 = arith.constant 0 : i32
    %c0_i32_0 = arith.constant 0 : i32
    %c0_i32_1 = arith.constant 0 : i32
    return %arg0, %c0_i32, %c0_i32_0 : i32, i32, i32
  }
}

</mosaic_0001>

<bundles_post_ra>
// kernel: tpu_custom_call.1
= control target key start
LH: loop header
LB: loop body
LE: loop exit
PB: predicated region body
PF: predicated region fallthrough
CT: control target
= control target key end

     0   :  { %10 = vsyncpa [#allocation3], 0  ;;  %s4596_s0 = inlined_call_operand.vmem [shape: f32[2,8,32], index: 0, kind: input, shape index: {}]   ;;  %s4597_s1 = inlined_call_operand.vmem [shape: f32[2,1,8], index: 1, kind: input, shape index: {}]   ;;  %s4598_s2 = inlined_call_operand.vmem [shape: bf16[3,32,192], index: 2, kind: input, shape index: {}]   ;;  %s4599_s3 = inlined_call_operand.vmem [shape: bf16[3,64,32], index: 3, kind: input, shape index: {}]   ;;  %s4600_s4 = inlined_call_operand.vmem [shape: f32[3,3,128], index: 4, kind: input, shape index: {}]   ;;  %s4601_s5 = inlined_call_operand.hbm [shape: f32[2,8,32], index: 5, kind: output, shape index: {}]  }
   0x1   :  { %12 = vsyncpa [#allocation3 + $0x1], 0  ;;  %s3842_s18 = smov 0   ;;  %s3844_s19 = smov 0  }
   0x2   :  { %s3846_s20 = smov 0   ;;  %s3848_s21 = smov 0  }
   0x3 LB: > { %s3863_s22 = sadd.s32 4294967295, %s3801_s21   ;;  %s3074_s23 = sadd.s32 4294967294, %s3801_s21   ;;  %s3801_s21 = sphi %s3848_s21, %s4607_s21   ;;  %s3797_s20 = sphi %s3846_s20, %s4606_s20   ;;  %s3793_s19 = sphi %s3844_s19, %s4605_s19   ;;  %s3789_s18 = sphi %s3842_s18, %s4604_s18  }
   0x4   : > { %s3867_s24 = sadd.s32 1, %s3801_s21   ;;  %s140_s25 = sadd.s32 1, %s3797_s20 }
   0x5   : > { %s137_s26 = ssub.s32 %s3801_s21, %s3867_s24  ;;  %p150_p0 = scmp.ne.s32.totalorder %s3797_s20, %s3793_s19 }
   0x6   : > { %p138_p1 = scmp.eq.s32.totalorder %s137_s26, 0  ;;  %p151_p2 = scmp.eq.s32.totalorder %s3863_s22, 1 }
   0x7   : > { %p156_p3 = scmp.ne.s32.totalorder %s3793_s19, %s3789_s18  ;;  %p157_p4 = scmp.eq.s32.totalorder %s3074_s23, 1 }
   0x8   : > { %s3878_s27 = scalar_select %p138_p1, %s3797_s20, %s140_s25  }
   0x9   : > { %p3880_p5 = por %p151_p2, %p150_p0  ;;  %p3884_p6 = por %p157_p4, %p156_p3 }
   0xa   : > { %p3077_p7 = scmp.ge.s32.totalorder %s3801_s21, 1  ;;  %p197_p8 = scmp.lt.s32.totalorder %s3801_s21, 3 }
   0xc   : > { %p198_p9 = pnand %p3077_p7, %p197_p8 }
   0xd   : > { %p227_p10 = scmp.lt.s32.totalorder (!%p198_p9), %s3863_s22, 1  ;;  %vm251_vm0 = vcmask (!%p198_p9), 261120   ;;  %v266_v2 = vlaneseq (!%p198_p9)  ;;  %v3910_v5 = vld [vmem:[%s4600_s4] sm:$0x7] (!%p198_p9)  ;;  %s3803_s12 = smov (!%p198_p9), 96   ;;  %v3928_v13 = vld [vmem:[%s4598_s2 + $0x8] sm:$0xff] (!%p198_p9) }
   0xe   : > { %201 = sbr.rel (%p198_p9) target bundleno = 8188 (0x1ffc), region = 40  ;;  %v3923_v12 = vld [vmem:[%s4598_s2] sm:$0xff] (!%p198_p9)  ;;  %v3804_v14 = vmov (!%p198_p9), 0.0   ;;  %v3938_v16 = vld [vmem:[%s4598_s2 + $0x10] sm:$0xff] (!%p198_p9)  ;;  %v3943_v17 = vld [vmem:[%s4598_s2 + $0x18] sm:$0xff] (!%p198_p9)  ;;  %vm3805_vm1 = vmmov (!%p198_p9), 0  }
   0xf   : > { %v3902_v3 = vshrl.u32 (!%p198_p9), %v266_v2, 7  ;;  %3296 = vmatprep.subr.bf16.mxu1 (!%p198_p9), %v3804_v14  ;;  %v3080_v15 = vcombine.low (!%p198_p9), %v3923_v12, %v3928_v13  ;;  %3310 = vmatprep.subr.bf16.mxu0 (!%p198_p9), %v3804_v14  ;;  %v3081_v18 = vcombine.low (!%p198_p9), %v3938_v16, %v3943_v17  ;;  %s3807_s7 = smov (!%p198_p9), 120   ;;  %s3808_s8 = smov (!%p198_p9), 104   ;;  %vm352_vm2 = vcmask (!%p198_p9), 64512  }
  0x10   : > { %3300 = vmatprep.mubr.msk.bf16.mxu1 (!%p198_p9), %vm3805_vm1, %v3804_v14  ;;  %3312 = vmatprep.mubr.msk.bf16.mxu0 (!%p198_p9), %vm3805_vm1, %v3804_v14  ;;  %vm596_vm3 = vcmask (!%p198_p9), 1043456   ;;  %s3810_s13 = smov (!%p198_p9), 32   ;;  %vm1116_vm4 = vcmask (!%p198_p9), 523264   ;;  %s224_s10 = sand.u32 (!%p198_p9), 1, %s3793_s19  }
  0x11   : > { %v3905_v4 = vsub.s32 (!%p198_p9), 0, %v3902_v3  ;;  %3297 = vmatpush3.bf16.msra.mxu1 (!%p198_p9), %v3080_v15  ;;  %v3957_v28 = vsub.s32 (!%p198_p9), 1, %v3902_v3  ;;  %s3188_s14 = sshll.u32 (!%p198_p9), %s3863_s22, 7 }
  0x12   : > { %3298 = vmatprep.subr.bf16.mxu1 (!%p198_p9), %v3804_v14  ;;  %s4553_s25 = scalar_lea.hbm (!%p198_p9), %s4601_s5, %s3188_s14 }
  0x13   : > { %v3914_v6 = vrot.slane (!%p198_p9), %v3910_v5, %v3905_v4  ;;  %v3961_v29 = vrot.slane (!%p198_p9), %v3910_v5, %v3957_v28 }
  0x15   : > { %s3892_s30 = scalar_select %p227_p10, %s3863_s22, 1  ;;  %272 = vrot.lane.b32.xlu1 %v3914_v6, %s3803_s12  ;;  %3299 = vmatpush3.bf16.msra.mxu1 %v3081_v18 }
  0x16   : > { %3304 = vmatprep.subr.bf16.mxu1 %v3804_v14  ;;  %s2993_s22 = scalar_lea.sflag [#allocation3], %s224_s10 }
  0x17   : > { %s3079_s6 = sshll.u32 %s3892_s30, 3  ;;  %s233_s11 = scalar_lea.vmem %s4597_s1, %s3892_s30 }
  0x18   : > { %s230_s9 = scalar_lea.vmem %s4596_s0, %s3079_s6  ;;  %s3806_s6 = smov 112   ;;  %v236_v47 = vld [vmem:[%s233_s11] sm:$0x1] }
  0x19   : > { %v3898_v0 = vld [vmem:[%s230_s9] sm:$0xff]  ;;  %v237_v48 = vmul.f32 -1e+30, %v236_v47  ;;  %s3809_s30 = smov 64   ;;  %s3078_s11 = sshll.u32 %s224_s10, 3 }
  0x1a   : > { %v252_v1 = vsel %vm251_vm0, %v3898_v0, 0.0  ;;  %s226_s15 = scalar_lea.vmem [#allocation2], %s3078_s11 }
  0x1b   : > { %253 = vadd.xlane.f32.xlu0 %v252_v1  ;;  %v4015_v49 = vrot.slane %v237_v48, %v3905_v4  ;;  %v3091_v48 = vcombine.low %v3923_v12, %v3923_v12  ;;  %s3006_s16 = sshll.u32 %s226_s15, 4  ;;  %s4555_s16 = int_to_ptr.vmem [resolvable:$true] %s3006_s16 }
  0x87   : > { %v273_v24 = vpop.permute.xlu1 %272 }
  0xa8   : > { %v254_v7 = vpop.xlane.xlu0 %253 }
  0xa9   : > { %v256_v8 = vmul.f32 0.03125, %v254_v7 }
  0xab   : > { %v257_v9 = vsub.f32 %v3898_v0, %v256_v8 }
  0xad   : > { %v258_v10 = vmul.f32 %v257_v9, %v257_v9 }
  0xaf   : > { %v259_v11 = vsel %vm251_vm0, %v258_v10, 0.0 }
  0xb0   : > { %260 = vadd.xlane.f32.xlu0 %v259_v11 }
 0x13d   : > { %v261_v19 = vpop.xlane.xlu0 %260 }
 0x13e   : > { %v262_v20 = vmul.f32 0.03125, %v261_v19 }
 0x140   : > { %v263_v21 = vadd.f32 1e-05, %v262_v20 }
 0x142   : > { %3679 = vrsqrt.f32 %v263_v21 }
 0x14c   : > { %v3680_v22 = vpop.eup %3679 }
 0x14d   : > { %v265_v23 = vmul.f32 %v3680_v22, %v257_v9 }
 0x14f   : > { %v270_v25 = vmul.f32 %v3914_v6, %v265_v23 }
 0x151   : > { %v275_v26 = vadd.f32 %v273_v24, %v270_v25 }
 0x153   : > { %v276_v27 = vpack.c.bf16 %v275_v26, %v275_v26 }
 0x155   : > { %3301 = vmatmul.mubr.msk.bf16.vlgmr.msra.gmra.mrb[0].mxu1 %vm251_vm0, %v276_v27 }
 0x156   : > { %3306 = vmatprep.mubr.msk.bf16.mxu1 %vm3805_vm1, %v3804_v14 }
 0x228   : > { %v330_v30 = vpop.f32.mrb[0].mxu1 }
 0x229   : > { %v331_v31 = vadd.f32 %v330_v30, %v3961_v29  ;;  %v3302_v32 = vpop.f32.mrb[1].mxu1 }
 0x22a   : > { %v333_v33 = vpop.f32.mrb[2].mxu1 }
 0x22b   : > { %v3964_v34 = vpack.c.bf16 %v331_v31, %v331_v31  ;;  %v3303_v35 = vpop.f32.mrb[3].mxu1 }
 0x22d   : > { %340 = vrot.lane.b32.xlu0 %v3964_v34, %s3806_s6  ;;  %338 = vrot.lane.b32.xlu1 %v3964_v34, %s3807_s7 }
 0x231   : > { %342 = vrot.lane.b32.xlu1 %v3964_v34, %s3808_s8 }
 0x235   : > { %350 = vrot.lane.b32.xlu1 %v3964_v34, %s3803_s12 }
 0x29f   : > { %v3974_v36 = vpop.permute.xlu1 %338  ;;  %v3978_v37 = vpop.permute.xlu0 %340 }
 0x2a0   : > { %399 = vrot.lane.b32.xlu1 %v3974_v36, %s3803_s12 }
 0x2a3   : > { %v3980_v38 = vpop.permute.xlu1 %342 }
 0x2a4   : > { %447 = vrot.lane.b32.xlu1 %v3978_v37, %s3803_s12 }
 0x2a7   : > { %v351_v39 = vpop.permute.xlu1 %350 }
 0x2a8   : > { %v357_v40 = vsel %vm352_vm2, %v351_v39, 0  ;;  %495 = vrot.lane.b32.xlu1 %v3980_v38, %s3803_s12 }
 0x2a9   : > { %3305 = vmatpush3.bf16.xpose.msra.mxu1 %v357_v40 }
 0x2aa   : > { %3316 = vmatprep.subr.bf16.mxu1 %v3804_v14 }
 0x2b0   : > { %3307 = vmatmul.mubr.msk.bf16.vlgmr.msra.gmra.mrb[4].mxu1 %vm352_vm2, %v3964_v34 }
 0x2b1   : > { %3318 = vmatprep.mubr.msk.bf16.mxu1 %vm3805_vm1, %v3804_v14 }
 0x312   : > { %v400_v41 = vpop.permute.xlu1 %399 }
 0x313   : > { %v405_v42 = vsel %vm352_vm2, %v400_v41, 0 }
 0x314   : > { %3311 = vmatpush3.bf16.xpose.msra.mxu0 %v405_v42 }
 0x315   : > { %3322 = vmatprep.subr.bf16.mxu0 %v3804_v14 }
 0x316   : > { %v448_v43 = vpop.permute.xlu1 %447 }
 0x317   : > { %v453_v44 = vsel %vm352_vm2, %v448_v43, 0 }
 0x318   : > { %3317 = vmatpush3.bf16.xpose.msra.mxu1 %v453_v44 }
 0x319   : > { %3328 = vmatprep.subr.bf16.mxu1 %v3804_v14 }
 0x31a   : > { %v496_v45 = vpop.permute.xlu1 %495 }
 0x31b   : > { %v501_v46 = vsel %vm352_vm2, %v496_v45, 0  ;;  %3313 = vmatmul.mubr.msk.bf16.vlgmr.msra.gmra.mrb[0].mxu0 %vm352_vm2, %v3974_v36 }
 0x31c   : > { %3323 = vmatpush3.bf16.xpose.msra.mxu0 %v501_v46  ;;  %3324 = vmatprep.mubr.msk.bf16.mxu0 %vm3805_vm1, %v3804_v14 }
 0x31d   : > { %3334 = vmatprep.subr.bf16.mxu0 %v3804_v14 }
 0x31f   : > { %3319 = vmatmul.mubr.msk.bf16.vlgmr.msra.gmra.mrb[8].mxu1 %vm352_vm2, %v3978_v37 }
 0x320   : > { %3330 = vmatprep.mubr.msk.bf16.mxu1 %vm3805_vm1, %v3804_v14 }
 0x323   : > { %3325 = vmatmul.mubr.msk.bf16.vlgmr.msra.gmra.mrb[4].mxu0 %vm352_vm2, %v3980_v38 }
 0x324   : > { %3336 = vmatprep.mubr.msk.bf16.mxu0 %vm3805_vm1, %v3804_v14 }
 0x383   : > { %v393_v50 = vpop.f32.mrb[4].mxu1 }
 0x384   : > { %v394_v51 = vadd.f32 %v393_v50, %v4015_v49  ;;  %v3308_v52 = vpop.f32.mrb[5].mxu1  ;;  %v3093_v50 = vcombine.low %v3928_v13, %v3928_v13 }
 0x385   : > { %v396_v53 = vpop.f32.mrb[6].mxu1 }
 0x386   : > { %v3309_v54 = vpop.f32.mrb[7].mxu1  ;;  %v543_v55 = vsel %vm352_vm2, %v394_v51, -inf }
 0x387   : > { %544 = vmax.xlane.f32.xlu1 %v543_v55 }
 0x3ee   : > { %v441_v56 = vpop.f32.mrb[0].mxu0 }
 0x3ef   : > { %v442_v57 = vadd.f32 %v441_v56, %v4015_v49  ;;  %v3314_v58 = vpop.f32.mrb[1].mxu0 }
 0x3f0   : > { %v444_v59 = vpop.f32.mrb[2].mxu0 }
 0x3f1   : > { %v3315_v60 = vpop.f32.mrb[3].mxu0  ;;  %v546_v61 = vsel %vm352_vm2, %v442_v57, -inf }
 0x3f2   : > { %547 = vmax.xlane.f32.xlu0 %v546_v61  ;;  %v489_v62 = vpop.f32.mrb[8].mxu1 }
 0x3f3   : > { %v490_v63 = vadd.f32 %v489_v62, %v4015_v49  ;;  %v3320_v1 = vpop.f32.mrb[9].mxu1 }
 0x3f4   : > { %v492_v2 = vpop.f32.mrb[10].mxu1 }
 0x3f5   : > { %v3321_v7 = vpop.f32.mrb[11].mxu1  ;;  %v549_v8 = vsel %vm352_vm2, %v490_v63, -inf }
 0x3f6   : > { %v537_v9 = vpop.f32.mrb[4].mxu0  ;;  %550 = vmax.xlane.f32.xlu0 %v549_v8 }
 0x3f7   : > { %v538_v10 = vadd.f32 %v537_v9, %v4015_v49  ;;  %v3326_v11 = vpop.f32.mrb[5].mxu0 }
 0x3f8   : > { %v540_v15 = vpop.f32.mrb[6].mxu0 }
 0x3f9   : > { %v3327_v18 = vpop.f32.mrb[7].mxu0  ;;  %v552_v19 = vsel %vm352_vm2, %v538_v10, -inf }
 0x3fa   : > { %553 = vmax.xlane.f32.xlu1 %v552_v19 }
 0x40b   : > { %640 = vrot.lane.b32.xlu1 %v3974_v36, %s3809_s30 }
 0x40c   : > { %591 = vrot.lane.b32.xlu0 %v3964_v34, %s3809_s30 }
 0x414   : > { %v545_v20 = vpop.xlane.xlu1 %544 }
 0x415   : > { %v555_v21 = vsub.f32 %v394_v51, %v545_v20  ;;  %v3095_v51 = vcombine.low %v3938_v16, %v3938_v16 }
 0x417   : > { %v559_v22 = vmul.f32 1.442695, %v555_v21 }
 0x419   : > { %3681 = vpow2.f32 %v559_v22 }
 0x423   : > { %v3682_v23 = vpop.eup %3681 }
 0x424   : > { %v567_v24 = vsel %vm352_vm2, %v3682_v23, 0.0 }
 0x42b   : > { %568 = vadd.xlane.f32.xlu0 %v567_v24 }
 0x47f   : > { %v548_v25 = vpop.xlane.xlu0 %547 }
 0x480   : > { %v556_v26 = vsub.f32 %v442_v57, %v548_v25 }
 0x482   : > { %v561_v27 = vmul.f32 1.442695, %v556_v26 }
 0x483   : > { %v551_v30 = vpop.xlane.xlu0 %550 }
 0x484   : > { %3683 = vpow2.f32 %v561_v27  ;;  %v557_v31 = vsub.f32 %v490_v63, %v551_v30 }
 0x486   : > { %v563_v32 = vmul.f32 1.442695, %v557_v31 }
 0x487   : > { %v554_v33 = vpop.xlane.xlu1 %553  ;;  %v592_v35 = vpop.permute.xlu0 %591 }
 0x488   : > { %3685 = vpow2.f32 %v563_v32  ;;  %v558_v34 = vsub.f32 %v538_v10, %v554_v33  ;;  %v598_v36 = vsel %vm596_vm3, %v592_v35, 0 }
 0x489   : > { %3329 = vmatpush3.bf16.msra.mxu1 %v598_v36 }
 0x48a   : > { %v565_v39 = vmul.f32 1.442695, %v558_v34  ;;  %3340 = vmatprep.subr.bf16.mxu1 %v3804_v14 }
 0x48b   : > { %v641_v40 = vpop.permute.xlu1 %640 }
 0x48c   : > { %3687 = vpow2.f32 %v565_v39  ;;  %v646_v41 = vsel %vm596_vm3, %v641_v40, 0  ;;  %v3099_v39 = vcombine.high %v3923_v12, %v3928_v13 }
 0x48d   : > { %3335 = vmatpush3.bf16.msra.mxu0 %v646_v41 }
 0x48e   : > { %v3684_v42 = vpop.eup %3683  ;;  %3346 = vmatprep.subr.bf16.mxu0 %v3804_v14 }
 0x48f   : > { %v570_v43 = vsel %vm352_vm2, %v3684_v42, 0.0 }
 0x490   : > { %571 = vadd.xlane.f32.xlu1 %v570_v43 }
 0x492   : > { %v3686_v44 = vpop.eup %3685 }
 0x493   : > { %v573_v45 = vsel %vm352_vm2, %v3686_v44, 0.0 }
 0x494   : > { %574 = vadd.xlane.f32.xlu0 %v573_v45 }
 0x496   : > { %v3688_v46 = vpop.eup %3687 }
 0x497   : > { %v576_v47 = vsel %vm352_vm2, %v3688_v46, 0.0 }
 0x498   : > { %577 = vadd.xlane.f32.xlu1 %v576_v47 }
 0x4a9   : > { %688 = vrot.lane.b32.xlu1 %v3978_v37, %s3809_s30  ;;  %v3097_v37 = vcombine.low %v3943_v17, %v3943_v17 }
 0x4aa   : > { %736 = vrot.lane.b32.xlu0 %v3980_v38, %s3809_s30 }
 0x4ad   : > { %789 = vrot.lane.b32.xlu1 %v3091_v48, %s3810_s13 }
 0x4ae   : > { %843 = vrot.lane.b32.xlu0 %v3093_v50, %s3810_s13 }
 0x4b1   : > { %897 = vrot.lane.b32.xlu1 %v3095_v51, %s3810_s13 }
 0x4b2   : > { %951 = vrot.lane.b32.xlu0 %v3097_v37, %s3810_s13 }
 0x4b8   : > { %v569_v52 = vpop.xlane.xlu0 %568 }
 0x4b9   : > { %3689 = vrcp.f32 %v569_v52 }
 0x4c3   : > { %v3690_v38 = vpop.eup %3689 }
 0x4c4   : > { %v583_v53 = vmul.f32 %v3690_v38, %v3682_v23 }
 0x4c6   : > { %v587_v54 = vpack.c.bf16 %v583_v53, %v583_v53 }
 0x4c8   : > { %3331 = vmatmul.mubr.msk.bf16.vlgmr.msra.gmra.mrb[12].mxu1 %vm352_vm2, %v587_v54 }
 0x4c9   : > { %3342 = vmatprep.mubr.msk.bf16.mxu1 %vm3805_vm1, %v3804_v14 }
 0x51d   : > { %v572_v55 = vpop.xlane.xlu1 %571 }
 0x51e   : > { %3691 = vrcp.f32 %v572_v55 }
 0x521   : > { %v575_v56 = vpop.xlane.xlu0 %574 }
 0x522   : > { %3693 = vrcp.f32 %v575_v56 }
 0x525   : > { %v578_v57 = vpop.xlane.xlu1 %577  ;;  %v737_v61 = vpop.permute.xlu0 %736 }
 0x526   : > { %3695 = vrcp.f32 %v578_v57  ;;  %v742_v7 = vsel %vm596_vm3, %v737_v61, 0 }
 0x528   : > { %v3692_v58 = vpop.eup %3691 }
 0x529   : > { %v584_v59 = vmul.f32 %v3692_v58, %v3684_v42  ;;  %v689_v60 = vpop.permute.xlu1 %688  ;;  %v844_v15 = vpop.permute.xlu0 %843 }
 0x52a   : > { %v694_v62 = vsel %vm596_vm3, %v689_v60, 0  ;;  %v849_v20 = vsel %vm596_vm3, %v844_v15, 0 }
 0x52b   : > { %3341 = vmatpush3.bf16.msra.mxu1 %v694_v62  ;;  %v588_v63 = vpack.c.bf16 %v584_v59, %v584_v59 }
 0x52c   : > { %v3694_v1 = vpop.eup %3693  ;;  %3352 = vmatprep.subr.bf16.mxu1 %v3804_v14 }
 0x52d   : > { %v585_v2 = vmul.f32 %v3694_v1, %v3686_v44  ;;  %3337 = vmatmul.mubr.msk.bf16.vlgmr.msra.gmra.mrb[8].mxu0 %vm352_vm2, %v588_v63  ;;  %v790_v8 = vpop.permute.xlu1 %789  ;;  %v952_v30 = vpop.permute.xlu0 %951 }
 0x52e   : > { %3347 = vmatpush3.bf16.msra.mxu0 %v742_v7  ;;  %3348 = vmatprep.mubr.msk.bf16.mxu0 %vm3805_vm1, %v3804_v14  ;;  %v795_v10 = vsel %vm596_vm3, %v790_v8, 0  ;;  %v957_v35 = vsel %vm596_vm3, %v952_v30, 0 }
 0x52f   : > { %v589_v9 = vpack.c.bf16 %v585_v2, %v585_v2  ;;  %3358 = vmatprep.subr.bf16.mxu0 %v3804_v14 }
 0x530   : > { %v3696_v11 = vpop.eup %3695 }
 0x531   : > { %v586_v18 = vmul.f32 %v3696_v11, %v3688_v46  ;;  %3343 = vmatmul.mubr.msk.bf16.vlgmr.msra.gmra.mrb[16].mxu1 %vm352_vm2, %v589_v9  ;;  %v898_v21 = vpop.permute.xlu1 %897 }
 0x532   : > { %3353 = vmatpush3.bf16.msra.mxu1 %v795_v10  ;;  %3354 = vmatprep.mubr.msk.bf16.mxu1 %vm3805_vm1, %v3804_v14  ;;  %v903_v25 = vsel %vm596_vm3, %v898_v21, 0 }
 0x533   : > { %v590_v19 = vpack.c.bf16 %v586_v18, %v586_v18  ;;  %3364 = vmatprep.subr.bf16.mxu1 %v3804_v14 }
 0x535   : > { %3349 = vmatmul.mubr.msk.bf16.vlgmr.msra.gmra.mrb[12].mxu0 %vm352_vm2, %v590_v19 }
 0x536   : > { %3359 = vmatpush3.bf16.msra.mxu0 %v849_v20  ;;  %3360 = vmatprep.mubr.msk.bf16.mxu0 %vm3805_vm1, %v3804_v14 }
 0x537   : > { %3370 = vmatprep.subr.bf16.mxu0 %v3804_v14 }
 0x59b   : > { %v634_v22 = vpop.f32.mrb[12].mxu1 }
 0x59c   : > { %v784_v23 = vpack.c.bf16 %v634_v22, %v634_v22  ;;  %v3332_v24 = vpop.f32.mrb[13].mxu1 }
 0x59d   : > { %v637_v26 = vpop.f32.mrb[14].mxu1  ;;  %v3100_v24 = vcombine.high %v3938_v16, %v3943_v17 }
 0x59e   : > { %v3333_v27 = vpop.f32.mrb[15].mxu1  ;;  %3355 = vmatmul.mubr.msk.bf16.vlgmr.msra.gmra.mrb[20].mxu1 %vm352_vm2, %v784_v23  ;;  %v3652_v26 = vld [vmem:[%s4599_s3 + $0x8] sm:$0xff]  }
 0x59f   : > { %3365 = vmatpush3.bf16.msra.mxu1 %v903_v25  ;;  %3366 = vmatprep.mubr.msk.bf16.mxu1 %vm3805_vm1, %v3804_v14  ;;  %v4112_v25 = vsub.s32 2, %v3902_v3 }
 0x5a0   : > { %3376 = vmatprep.subr.bf16.mxu1 %v3804_v14 }
 0x600   : > { %v682_v31 = vpop.f32.mrb[8].mxu0 }
 0x601   : > { %v785_v32 = vpack.c.bf16 %v682_v31, %v682_v31  ;;  %v3338_v33 = vpop.f32.mrb[9].mxu0 }
 0x602   : > { %v685_v34 = vpop.f32.mrb[10].mxu0 }
 0x603   : > { %v3339_v36 = vpop.f32.mrb[11].mxu0  ;;  %3361 = vmatmul.mubr.msk.bf16.vlgmr.msra.gmra.mrb[16].mxu0 %vm352_vm2, %v785_v32 }
 0x604   : > { %v730_v40 = vpop.f32.mrb[16].mxu1  ;;  %3371 = vmatpush3.bf16.msra.mxu0 %v957_v35  ;;  %3372 = vmatprep.mubr.msk.bf16.mxu0 %vm3805_vm1, %v3804_v14  ;;  %v3654_v36 = vld [vmem:[%s4599_s3 + $0x18] sm:$0xff]  }
 0x605   : > { %v786_v41 = vpack.c.bf16 %v730_v40, %v730_v40  ;;  %v3344_v42 = vpop.f32.mrb[17].mxu1  ;;  %3384 = vmatprep.subr.bf16.mxu0 %v3804_v14 }
 0x606   : > { %v733_v43 = vpop.f32.mrb[18].mxu1 }
 0x607   : > { %v3345_v44 = vpop.f32.mrb[19].mxu1  ;;  %3367 = vmatmul.mubr.msk.bf16.vlgmr.msra.gmra.mrb[24].mxu1 %vm352_vm2, %v786_v41 }
 0x608   : > { %v778_v45 = vpop.f32.mrb[12].mxu0  ;;  %3377 = vmatpush3.bf16.msra.mxu1 %v3099_v39  ;;  %3380 = vmatprep.mubr.msk.bf16.mxu1 %vm3805_vm1, %v3804_v14 }
 0x609   : > { %v787_v46 = vpack.c.bf16 %v778_v45, %v778_v45  ;;  %v3350_v12 = vpop.f32.mrb[13].mxu0  ;;  %3378 = vmatprep.subr.bf16.mxu1 %v3804_v14 }
 0x60a   : > { %v781_v13 = vpop.f32.mrb[14].mxu0 }
 0x60b   : > { %v3351_v47 = vpop.f32.mrb[15].mxu0  ;;  %3373 = vmatmul.mubr.msk.bf16.vlgmr.msra.gmra.mrb[20].mxu0 %vm352_vm2, %v787_v46 }
 0x60c   : > { %3392 = vmatprep.mubr.msk.bf16.mxu0 %vm3805_vm1, %v3804_v14  ;;  %3379 = vmatpush3.bf16.msra.mxu1 %v3100_v24 }
 0x60d   : > { %3396 = vmatprep.subr.bf16.mxu1 %v3804_v14 }
 0x671   : > { %v831_v48 = vpop.f32.mrb[20].mxu1 }
 0x672   : > { %838 = vrot.lane.b32.xlu1 %v831_v48, %s3803_s12  ;;  %v3356_v50 = vpop.f32.mrb[21].mxu1 }
 0x673   : > { %v834_v51 = vpop.f32.mrb[22].mxu1 }
 0x674   : > { %v3357_v37 = vpop.f32.mrb[23].mxu1 }
 0x6d6   : > { %v885_v52 = vpop.f32.mrb[16].mxu0 }
 0x6d7   : > { %892 = vrot.lane.b32.xlu0 %v885_v52, %s3803_s12  ;;  %v3362_v38 = vpop.f32.mrb[17].mxu0 }
 0x6d8   : > { %v888_v53 = vpop.f32.mrb[18].mxu0 }
 0x6d9   : > { %v3363_v54 = vpop.f32.mrb[19].mxu0 }
 0x6da   : > { %v939_v55 = vpop.f32.mrb[24].mxu1 }
 0x6db   : > { %946 = vrot.lane.b32.xlu1 %v939_v55, %s3803_s12  ;;  %v3368_v56 = vpop.f32.mrb[25].mxu1 }
 0x6dc   : > { %v942_v57 = vpop.f32.mrb[26].mxu1  ;;  %v4145_v56 = vld [vmem:[%s4600_s4 + $0x4] sm:$0x7] }
 0x6dd   : > { %v3369_v58 = vpop.f32.mrb[27].mxu1  ;;  %v4149_v57 = vrot.slane %v4145_v56, %v3905_v4 }
 0x6de   : > { %v993_v59 = vpop.f32.mrb[20].mxu0  ;;  %v4154_v58 = vld [vmem:[%s4598_s2 + $0x20] sm:$0xff] }
 0x6df   : > { %1000 = vrot.lane.b32.xlu0 %v993_v59, %s3803_s12  ;;  %v3374_v60 = vpop.f32.mrb[21].mxu0  ;;  %v4159_v59 = vld [vmem:[%s4598_s2 + $0x28] sm:$0xff] }
 0x6e0   : > { %v996_v61 = vpop.f32.mrb[22].mxu0  ;;  %v3120_v60 = vcombine.low %v4154_v58, %v4159_v59 }
 0x6e1   : > { %v3375_v62 = vpop.f32.mrb[23].mxu0  ;;  %v4169_v61 = vld [vmem:[%s4598_s2 + $0x30] sm:$0xff] }
 0x6e2   : > { %v4174_v62 = vld [vmem:[%s4598_s2 + $0x38] sm:$0xff] }
 0x6e4   : > { %v839_v63 = vpop.permute.xlu1 %838 }
 0x6e5   : > { %v841_v2 = vadd.f32 %v839_v63, %v3961_v29  ;;  %v3121_v63 = vcombine.low %v4169_v61, %v4174_v62 }
 0x749   : > { %v893_v1 = vpop.permute.xlu0 %892 }
 0x74a   : > { %v895_v8 = vadd.f32 %v893_v1, %v841_v2 }
 0x74d   : > { %v947_v7 = vpop.permute.xlu1 %946 }
 0x74e   : > { %v949_v9 = vadd.f32 %v947_v7, %v895_v8 }
 0x751   : > { %v1001_v10 = vpop.permute.xlu0 %1000 }
 0x752   : > { %v1003_v11 = vadd.f32 %v1001_v10, %v949_v9 }
 0x754   : > { %1005 = vrot.lane.b32.xlu1 %v1003_v11, %s3810_s13 }
 0x7c6   : > { %v1006_v15 = vpop.permute.xlu1 %1005 }
 0x7c7   : > { %v1008_v18 = vadd.f32 %v1006_v15, %v3898_v0  ;;  %v3651_v0 = vld [vmem:[%s4599_s3] sm:$0xff]  }
 0x7c8   : > { %3385 = vmatpush3.bf16.msra.mxu0 %v3651_v0 }
 0x7c9   : > { %v1009_v19 = vsel %vm251_vm0, %v1008_v18, 0.0  ;;  %3386 = vmatprep.subr.bf16.mxu0 %v3804_v14 }
 0x7ca   : > { %1010 = vadd.xlane.f32.xlu0 %v1009_v19  ;;  %v4185_v19 = vrot.slane %v4145_v56, %v3957_v28 }
 0x7cc   : > { %3387 = vmatpush3.bf16.msra.mxu0 %v3652_v26 }
 0x7cd   : > { %3388 = vmatprep.subr.bf16.mxu0 %v3804_v14 }
 0x7e0   : > { %1022 = vrot.lane.b32.xlu0 %v3914_v6, %s3809_s30 }
 0x857   : > { %v1011_v20 = vpop.xlane.xlu0 %1010 }
 0x858   : > { %v1012_v21 = vmul.f32 0.03125, %v1011_v20 }
 0x85a   : > { %v1013_v22 = vsub.f32 %v1008_v18, %v1012_v21 }
 0x85b   : > { %v1023_v30 = vpop.permute.xlu0 %1022 }
 0x85c   : > { %v1014_v29 = vmul.f32 %v1013_v22, %v1013_v22 }
 0x85e   : > { %v1015_v23 = vsel %vm251_vm0, %v1014_v29, 0.0 }
 0x85f   : > { %1016 = vadd.xlane.f32.xlu1 %v1015_v23 }
 0x870   : > { %1026 = vrot.lane.b32.xlu1 %v3914_v6, %s3810_s13  ;;  %v1034_v6 = vrot.slane %v3910_v5, %v4112_v25  ;;  %v3653_v5 = vld [vmem:[%s4599_s3 + $0x10] sm:$0xff]  }
 0x871   : > { %3389 = vmatpush3.bf16.msra.mxu0 %v3653_v5 }
 0x872   : > { %1113 = vrot.lane.b32.xlu0 %v1034_v6, %s3809_s30  ;;  %3390 = vmatprep.subr.bf16.mxu0 %v3804_v14 }
 0x875   : > { %3391 = vmatpush3.bf16.msra.mxu0 %v3654_v36 }
 0x876   : > { %3410 = vmatprep.subr.bf16.mxu0 %v3804_v14 }
 0x8e4   : > { %v1114_v46 = vpop.permute.xlu0 %1113 }
 0x8ec   : > { %v1017_v16 = vpop.xlane.xlu1 %1016 }
 0x8ed   : > { %v1018_v17 = vmul.f32 0.03125, %v1017_v16 }
 0x8ef   : > { %v1019_v27 = vadd.f32 1e-05, %v1018_v17 }
 0x8f0   : > { %v1027_v32 = vpop.permute.xlu1 %1026 }
 0x8f1   : > { %3697 = vrsqrt.f32 %v1019_v27 }
 0x8fb   : > { %v3698_v3 = vpop.eup %3697 }
 0x8fc   : > { %v1021_v31 = vmul.f32 %v3698_v3, %v1013_v22 }
 0x8fe   : > { %v1025_v33 = vmul.f32 %v1023_v30, %v1021_v31 }
 0x900   : > { %v1029_v35 = vadd.f32 %v1027_v32, %v1025_v33 }
 0x902   : > { %v1030_v34 = vpack.c.bf16 %v1029_v35, %v1029_v35 }
 0x904   : > { %3381 = vmatmul.mubr.msk.bf16.vlgmr.msra.gmra.mrb[28].mxu1 %vm251_vm0, %v1030_v34 }
 0x905   : > { %3400 = vmatprep.mubr.msk.bf16.mxu1 %vm3805_vm1, %v3804_v14  ;;  %3397 = vmatpush3.bf16.msra.mxu1 %v3120_v60 }
 0x906   : > { %3398 = vmatprep.subr.bf16.mxu1 %v3804_v14 }
 0x909   : > { %3399 = vmatpush3.bf16.msra.mxu1 %v3121_v63 }
 0x90a   : > { %3404 = vmatprep.subr.bf16.mxu1 %v3804_v14 }
 0x9d7   : > { %v1080_v39 = vpop.f32.mrb[28].mxu1 }
 0x9d8   : > { %v1081_v40 = vadd.f32 %v1080_v39, %v1034_v6  ;;  %v3382_v41 = vpop.f32.mrb[29].mxu1 }
 0x9d9   : > { %v1083_v42 = vpop.f32.mrb[30].mxu1 }
 0x9da   : > { %v1086_v43 = vmax.f32 %v1081_v40, 0.0  ;;  %v3383_v44 = vpop.f32.mrb[31].mxu1 }
 0x9dc   : > { %v1087_v45 = vpack.c.bf16 %v1086_v43, %v1086_v43 }
 0x9de   : > { %3393 = vmatmul.mubr.msk.bf16.vlgmr.msra.gmra.mrb[24].mxu0 %vm1116_vm4, %v1087_v45 }
 0x9df   : > { %3412 = vmatprep.mubr.msk.bf16.mxu0 %vm3805_vm1, %v3804_v14 }
 0xab1   : > { %v1154_v12 = vpop.f32.mrb[24].mxu0 }
 0xab2   : > { %v1155_v13 = vadd.f32 %v1154_v12, %v1114_v46  ;;  %v3394_v47 = vpop.f32.mrb[25].mxu0 }
 0xab3   : > { %v1157_v48 = vpop.f32.mrb[26].mxu0 }
 0xab4   : > { %v4136_v50 = vadd.f32 %v1155_v13, %v1008_v18  ;;  %v3395_v51 = vpop.f32.mrb[27].mxu0 }
 0xab6   : > { %v1177_v37 = vsel %vm251_vm0, %v4136_v50, 0.0 }
 0xab7   : > { %1178 = vadd.xlane.f32.xlu1 %v1177_v37 }
 0xb44   : > { %v1179_v52 = vpop.xlane.xlu1 %1178 }
 0xb45   : > { %v1180_v38 = vmul.f32 0.03125, %v1179_v52 }
 0xb47   : > { %v1181_v53 = vsub.f32 %v4136_v50, %v1180_v38 }
 0xb49   : > { %v1182_v54 = vmul.f32 %v1181_v53, %v1181_v53 }
 0xb4b   : > { %v1183_v55 = vsel %vm251_vm0, %v1182_v54, 0.0 }
 0xb4c   : > { %1184 = vadd.xlane.f32.xlu0 %v1183_v55 }
 0xb62   : > { %1196 = vrot.lane.b32.xlu0 %v4149_v57, %s3803_s12 }
 0xbd9   : > { %v1185_v1 = vpop.xlane.xlu0 %1184 }
 0xbda   : > { %v1186_v2 = vmul.f32 0.03125, %v1185_v1 }
 0xbdc   : > { %v1187_v7 = vadd.f32 1e-05, %v1186_v2 }
 0xbdd   : > { %v1197_v10 = vpop.permute.xlu0 %1196 }
 0xbde   : > { %3699 = vrsqrt.f32 %v1187_v7 }
 0xbe8   : > { %v3700_v8 = vpop.eup %3699 }
 0xbe9   : > { %v1189_v9 = vmul.f32 %v3700_v8, %v1181_v53 }
 0xbeb   : > { %v1194_v11 = vmul.f32 %v4149_v57, %v1189_v9 }
 0xbed   : > { %v1199_v15 = vadd.f32 %v1197_v10, %v1194_v11 }
 0xbef   : > { %v1200_v18 = vpack.c.bf16 %v1199_v15, %v1199_v15 }
 0xbf1   : > { %3401 = vmatmul.mubr.msk.bf16.vlgmr.msra.gmra.mrb[32].mxu1 %vm251_vm0, %v1200_v18 }
 0xbf2   : > { %3406 = vmatprep.mubr.msk.bf16.mxu1 %vm3805_vm1, %v3804_v14 }
 0xcc4   : > { %v1254_v20 = vpop.f32.mrb[32].mxu1 }
 0xcc5   : > { %v1255_v21 = vadd.f32 %v1254_v20, %v4185_v19  ;;  %v3402_v22 = vpop.f32.mrb[33].mxu1 }
 0xcc6   : > { %v1257_v29 = vpop.f32.mrb[34].mxu1 }
 0xcc7   : > { %v4188_v23 = vpack.c.bf16 %v1255_v21, %v1255_v21  ;;  %v3403_v24 = vpop.f32.mrb[35].mxu1 }
 0xcc9   : > { %1266 = vrot.lane.b32.xlu0 %v4188_v23, %s3808_s8  ;;  %1262 = vrot.lane.b32.xlu1 %v4188_v23, %s3807_s7 }
 0xccd   : > { %1264 = vrot.lane.b32.xlu1 %v4188_v23, %s3806_s6 }
 0xcd1   : > { %1268 = vrot.lane.b32.xlu1 %v4188_v23, %s3803_s12 }
 0xd3b   : > { %v1263_v0 = vpop.permute.xlu1 %1262  ;;  %v4199_v26 = vpop.permute.xlu0 %1266 }
 0xd3c   : > { %1316 = vrot.lane.b32.xlu0 %v1263_v0, %s3803_s12 }
 0xd3f   : > { %v4201_v6 = vpop.permute.xlu1 %1264 }
 0xd40   : > { %1412 = vrot.lane.b32.xlu0 %v4199_v26, %s3803_s12  ;;  %1364 = vrot.lane.b32.xlu1 %v4201_v6, %s3803_s12 }
 0xd43   : > { %v1269_v16 = vpop.permute.xlu1 %1268 }
 0xd44   : > { %v1274_v17 = vsel %vm352_vm2, %v1269_v16, 0 }
 0xd45   : > { %3405 = vmatpush3.bf16.xpose.msra.mxu1 %v1274_v17 }
 0xd46   : > { %3416 = vmatprep.subr.bf16.mxu1 %v3804_v14 }
 0xd4c   : > { %3407 = vmatmul.mubr.msk.bf16.vlgmr.msra.gmra.mrb[36].mxu1 %vm352_vm2, %v4188_v23 }
 0xd4d   : > { %3418 = vmatprep.mubr.msk.bf16.mxu1 %vm3805_vm1, %v3804_v14 }
 0xdae   : > { %v1317_v27 = vpop.permute.xlu0 %1316 }
 0xdaf   : > { %v1322_v3 = vsel %vm352_vm2, %v1317_v27, 0 }
 0xdb0   : > { %3411 = vmatpush3.bf16.xpose.msra.mxu0 %v1322_v3 }
 0xdb1   : > { %3422 = vmatprep.subr.bf16.mxu0 %v3804_v14 }
 0xdb2   : > { %v1365_v30 = vpop.permute.xlu1 %1364  ;;  %v1413_v32 = vpop.permute.xlu0 %1412 }
 0xdb3   : > { %v1370_v31 = vsel %vm352_vm2, %v1365_v30, 0  ;;  %v1418_v33 = vsel %vm352_vm2, %v1413_v32, 0 }
 0xdb4   : > { %3417 = vmatpush3.bf16.xpose.msra.mxu1 %v1370_v31 }
 0xdb5   : > { %3428 = vmatprep.subr.bf16.mxu1 %v3804_v14 }
 0xdb7   : > { %3413 = vmatmul.mubr.msk.bf16.vlgmr.msra.gmra.mrb[28].mxu0 %vm352_vm2, %v1263_v0 }
 0xdb8   : > { %3423 = vmatpush3.bf16.xpose.msra.mxu0 %v1418_v33  ;;  %3424 = vmatprep.mubr.msk.bf16.mxu0 %vm3805_vm1, %v3804_v14  ;;  %v3131_v33 = vcombine.low %v4154_v58, %v4154_v58 }
 0xdb9   : > { %3434 = vmatprep.subr.bf16.mxu0 %v3804_v14 }
 0xdbb   : > { %3419 = vmatmul.mubr.msk.bf16.vlgmr.msra.gmra.mrb[40].mxu1 %vm352_vm2, %v4201_v6 }
 0xdbc   : > { %3430 = vmatprep.mubr.msk.bf16.mxu1 %vm3805_vm1, %v3804_v14 }
 0xdbf   : > { %3425 = vmatmul.mubr.msk.bf16.vlgmr.msra.gmra.mrb[32].mxu0 %vm352_vm2, %v4199_v26 }
 0xdc0   : > { %3436 = vmatprep.mubr.msk.bf16.mxu0 %vm3805_vm1, %v3804_v14 }
 0xe1f   : > { %v1310_v35 = vpop.f32.mrb[36].mxu1 }
 0xe20   : > { %v1311_v34 = vadd.f32 %v1310_v35, %v4015_v49  ;;  %v3408_v5 = vpop.f32.mrb[37].mxu1  ;;  %v3133_v35 = vcombine.low %v4159_v59, %v4159_v59 }
 0xe21   : > { %v1313_v36 = vpop.f32.mrb[38].mxu1 }
 0xe22   : > { %v3409_v39 = vpop.f32.mrb[39].mxu1  ;;  %v1460_v40 = vsel %vm352_vm2, %v1311_v34, -inf }
 0xe23   : > { %1461 = vmax.xlane.f32.xlu1 %v1460_v40 }
 0xe8a   : > { %v1358_v41 = vpop.f32.mrb[28].mxu0 }
 0xe8b   : > { %v1359_v42 = vadd.f32 %v1358_v41, %v4015_v49  ;;  %v3414_v43 = vpop.f32.mrb[29].mxu0 }
 0xe8c   : > { %v1361_v44 = vpop.f32.mrb[30].mxu0 }
 0xe8d   : > { %v3415_v45 = vpop.f32.mrb[31].mxu0  ;;  %v1463_v46 = vsel %vm352_vm2, %v1359_v42, -inf }
 0xe8e   : > { %1464 = vmax.xlane.f32.xlu0 %v1463_v46  ;;  %v1406_v12 = vpop.f32.mrb[40].mxu1 }
 0xe8f   : > { %v1407_v13 = vadd.f32 %v1406_v12, %v4015_v49  ;;  %v3420_v47 = vpop.f32.mrb[41].mxu1 }
 0xe90   : > { %v1409_v48 = vpop.f32.mrb[42].mxu1 }
 0xe91   : > { %v3421_v51 = vpop.f32.mrb[43].mxu1  ;;  %v1466_v37 = vsel %vm352_vm2, %v1407_v13, -inf }
 0xe92   : > { %v1454_v52 = vpop.f32.mrb[32].mxu0  ;;  %1467 = vmax.xlane.f32.xlu0 %v1466_v37 }
 0xe93   : > { %v1455_v38 = vadd.f32 %v1454_v52, %v4015_v49  ;;  %v3426_v53 = vpop.f32.mrb[33].mxu0 }
 0xe94   : > { %v1457_v54 = vpop.f32.mrb[34].mxu0 }
 0xe95   : > { %v3427_v55 = vpop.f32.mrb[35].mxu0  ;;  %v1469_v60 = vsel %vm352_vm2, %v1455_v38, -inf }
 0xe96   : > { %1470 = vmax.xlane.f32.xlu1 %v1469_v60 }
 0xea7   : > { %1556 = vrot.lane.b32.xlu1 %v1263_v0, %s3809_s30 }
 0xea8   : > { %1508 = vrot.lane.b32.xlu0 %v4188_v23, %s3809_s30 }
 0xeb0   : > { %v1462_v63 = vpop.xlane.xlu1 %1461 }
 0xeb1   : > { %v1472_v1 = vsub.f32 %v1311_v34, %v1462_v63  ;;  %v3135_v34 = vcombine.low %v4169_v61, %v4169_v61 }
 0xeb3   : > { %v1476_v2 = vmul.f32 1.442695, %v1472_v1 }
 0xeb5   : > { %3701 = vpow2.f32 %v1476_v2 }
 0xebf   : > { %v3702_v7 = vpop.eup %3701 }
 0xec0   : > { %v1484_v8 = vsel %vm352_vm2, %v3702_v7, 0.0 }
 0xec7   : > { %1485 = vadd.xlane.f32.xlu0 %v1484_v8 }
 0xf1b   : > { %v1465_v9 = vpop.xlane.xlu0 %1464 }
 0xf1c   : > { %v1473_v10 = vsub.f32 %v1359_v42, %v1465_v9 }
 0xf1e   : > { %v1478_v11 = vmul.f32 1.442695, %v1473_v10 }
 0xf1f   : > { %v1468_v15 = vpop.xlane.xlu0 %1467 }
 0xf20   : > { %3703 = vpow2.f32 %v1478_v11  ;;  %v1474_v18 = vsub.f32 %v1407_v13, %v1468_v15 }
 0xf22   : > { %v1480_v20 = vmul.f32 1.442695, %v1474_v18 }
 0xf23   : > { %v1471_v21 = vpop.xlane.xlu1 %1470  ;;  %v1509_v22 = vpop.permute.xlu0 %1508 }
 0xf24   : > { %3705 = vpow2.f32 %v1480_v20  ;;  %v1475_v29 = vsub.f32 %v1455_v38, %v1471_v21  ;;  %v1514_v23 = vsel %vm596_vm3, %v1509_v22, 0 }
 0xf25   : > { %3429 = vmatpush3.bf16.msra.mxu1 %v1514_v23 }
 0xf26   : > { %v1482_v24 = vmul.f32 1.442695, %v1475_v29  ;;  %3440 = vmatprep.subr.bf16.mxu1 %v3804_v14 }
 0xf27   : > { %v1557_v0 = vpop.permute.xlu1 %1556 }
 0xf28   : > { %3707 = vpow2.f32 %v1482_v24  ;;  %v1562_v16 = vsel %vm596_vm3, %v1557_v0, 0 }
 0xf29   : > { %3435 = vmatpush3.bf16.msra.mxu0 %v1562_v16 }
 0xf2a   : > { %v3704_v17 = vpop.eup %3703  ;;  %3446 = vmatprep.subr.bf16.mxu0 %v3804_v14 }
 0xf2b   : > { %v1487_v27 = vsel %vm352_vm2, %v3704_v17, 0.0 }
 0xf2c   : > { %1488 = vadd.xlane.f32.xlu1 %v1487_v27 }
 0xf2e   : > { %v3706_v3 = vpop.eup %3705 }
 0xf2f   : > { %v1490_v30 = vsel %vm352_vm2, %v3706_v3, 0.0 }
 0xf30   : > { %1491 = vadd.xlane.f32.xlu0 %v1490_v30 }
 0xf32   : > { %v3708_v31 = vpop.eup %3707 }
 0xf33   : > { %v1493_v32 = vsel %vm352_vm2, %v3708_v31, 0.0 }
 0xf34   : > { %1494 = vadd.xlane.f32.xlu1 %v1493_v32 }
 0xf45   : > { %1604 = vrot.lane.b32.xlu1 %v4201_v6, %s3809_s30  ;;  %v3137_v6 = vcombine.low %v4174_v62, %v4174_v62 }
 0xf46   : > { %1652 = vrot.lane.b32.xlu0 %v4199_v26, %s3809_s30 }
 0xf49   : > { %1705 = vrot.lane.b32.xlu1 %v3131_v33, %s3810_s13 }
 0xf4a   : > { %1759 = vrot.lane.b32.xlu0 %v3133_v35, %s3810_s13 }
 0xf4d   : > { %1813 = vrot.lane.b32.xlu1 %v3135_v34, %s3810_s13 }
 0xf4e   : > { %1867 = vrot.lane.b32.xlu0 %v3137_v6, %s3810_s13 }
 0xf54   : > { %v1486_v5 = vpop.xlane.xlu0 %1485 }
 0xf55   : > { %3709 = vrcp.f32 %v1486_v5 }
 0xf5f   : > { %v3710_v26 = vpop.eup %3709 }
 0xf60   : > { %v1500_v36 = vmul.f32 %v3710_v26, %v3702_v7 }
 0xf62   : > { %v1504_v39 = vpack.c.bf16 %v1500_v36, %v1500_v36 }
 0xf64   : > { %3431 = vmatmul.mubr.msk.bf16.vlgmr.msra.gmra.mrb[44].mxu1 %vm352_vm2, %v1504_v39 }
 0xf65   : > { %3442 = vmatprep.mubr.msk.bf16.mxu1 %vm3805_vm1, %v3804_v14 }
 0xfb9   : > { %v1489_v40 = vpop.xlane.xlu1 %1488 }
 0xfba   : > { %3711 = vrcp.f32 %v1489_v40 }
 0xfbd   : > { %v1492_v41 = vpop.xlane.xlu0 %1491 }
 0xfbe   : > { %3713 = vrcp.f32 %v1492_v41 }
 0xfc1   : > { %v1495_v42 = vpop.xlane.xlu1 %1494  ;;  %v1653_v46 = vpop.permute.xlu0 %1652 }
 0xfc2   : > { %3715 = vrcp.f32 %v1495_v42  ;;  %v1658_v51 = vsel %vm596_vm3, %v1653_v46, 0 }
 0xfc4   : > { %v3712_v43 = vpop.eup %3711 }
 0xfc5   : > { %v1501_v44 = vmul.f32 %v3712_v43, %v3704_v17  ;;  %v1605_v45 = vpop.permute.xlu1 %1604  ;;  %v1760_v54 = vpop.permute.xlu0 %1759 }
 0xfc6   : > { %v1610_v12 = vsel %vm596_vm3, %v1605_v45, 0  ;;  %v1765_v63 = vsel %vm596_vm3, %v1760_v54, 0 }
 0xfc7   : > { %3441 = vmatpush3.bf16.msra.mxu1 %v1610_v12  ;;  %v1505_v13 = vpack.c.bf16 %v1501_v44, %v1501_v44 }
 0xfc8   : > { %v3714_v47 = vpop.eup %3713  ;;  %3452 = vmatprep.subr.bf16.mxu1 %v3804_v14 }
 0xfc9   : > { %v1502_v48 = vmul.f32 %v3714_v47, %v3706_v3  ;;  %3437 = vmatmul.mubr.msk.bf16.vlgmr.msra.gmra.mrb[36].mxu0 %vm352_vm2, %v1505_v13  ;;  %v1706_v37 = vpop.permute.xlu1 %1705  ;;  %v1868_v15 = vpop.permute.xlu0 %1867 }
 0xfca   : > { %3447 = vmatpush3.bf16.msra.mxu0 %v1658_v51  ;;  %3448 = vmatprep.mubr.msk.bf16.mxu0 %vm3805_vm1, %v3804_v14  ;;  %v1711_v38 = vsel %vm596_vm3, %v1706_v37, 0  ;;  %v1873_v22 = vsel %vm596_vm3, %v1868_v15, 0 }
 0xfcb   : > { %v1506_v52 = vpack.c.bf16 %v1502_v48, %v1502_v48  ;;  %3458 = vmatprep.subr.bf16.mxu0 %v3804_v14 }
 0xfcc   : > { %v3716_v53 = vpop.eup %3715 }
 0xfcd   : > { %v1503_v55 = vmul.f32 %v3716_v53, %v3708_v31  ;;  %3443 = vmatmul.mubr.msk.bf16.vlgmr.msra.gmra.mrb[48].mxu1 %vm352_vm2, %v1506_v52  ;;  %v1814_v1 = vpop.permute.xlu1 %1813 }
 0xfce   : > { %3453 = vmatpush3.bf16.msra.mxu1 %v1711_v38  ;;  %3454 = vmatprep.mubr.msk.bf16.mxu1 %vm3805_vm1, %v3804_v14  ;;  %v1819_v9 = vsel %vm596_vm3, %v1814_v1, 0 }
 0xfcf   : > { %v1507_v60 = vpack.c.bf16 %v1503_v55, %v1503_v55  ;;  %3464 = vmatprep.subr.bf16.mxu1 %v3804_v14 }
 0xfd1   : > { %3449 = vmatmul.mubr.msk.bf16.vlgmr.msra.gmra.mrb[40].mxu0 %vm352_vm2, %v1507_v60 }
 0xfd2   : > { %3459 = vmatpush3.bf16.msra.mxu0 %v1765_v63  ;;  %3460 = vmatprep.mubr.msk.bf16.mxu0 %vm3805_vm1, %v3804_v14 }
 0xfd3   : > { %3470 = vmatprep.subr.bf16.mxu0 %v3804_v14 }
0x1037   : > { %v1550_v2 = vpop.f32.mrb[44].mxu1 }
0x1038   : > { %v1700_v7 = vpack.c.bf16 %v1550_v2, %v1550_v2  ;;  %v3432_v8 = vpop.f32.mrb[45].mxu1 }
0x1039   : > { %v1553_v10 = vpop.f32.mrb[46].mxu1 }
0x103a   : > { %v3433_v11 = vpop.f32.mrb[47].mxu1  ;;  %3455 = vmatmul.mubr.msk.bf16.vlgmr.msra.gmra.mrb[52].mxu1 %vm352_vm2, %v1700_v7  ;;  %v3663_v10 = vld [vmem:[%s4599_s3 + $0x20] sm:$0xff]  }
0x103b   : > { %3465 = vmatpush3.bf16.msra.mxu1 %v1819_v9  ;;  %3466 = vmatprep.mubr.msk.bf16.mxu1 %vm3805_vm1, %v3804_v14  ;;  %v3139_v9 = vcombine.high %v4154_v58, %v4159_v59  ;;  %v1950_v11 = vrot.slane %v4145_v56, %v4112_v25 }
0x103c   : > { %3476 = vmatprep.subr.bf16.mxu1 %v3804_v14 }
0x109c   : > { %v1598_v18 = vpop.f32.mrb[36].mxu0 }
0x109d   : > { %v1701_v20 = vpack.c.bf16 %v1598_v18, %v1598_v18  ;;  %v3438_v21 = vpop.f32.mrb[37].mxu0 }
0x109e   : > { %v1601_v29 = vpop.f32.mrb[38].mxu0 }
0x109f   : > { %v3439_v23 = vpop.f32.mrb[39].mxu0  ;;  %3461 = vmatmul.mubr.msk.bf16.vlgmr.msra.gmra.mrb[44].mxu0 %vm352_vm2, %v1701_v20  ;;  %v3665_v29 = vld [vmem:[%s4599_s3 + $0x30] sm:$0xff]  }
0x10a0   : > { %v1646_v24 = vpop.f32.mrb[48].mxu1  ;;  %3471 = vmatpush3.bf16.msra.mxu0 %v1873_v22  ;;  %3472 = vmatprep.mubr.msk.bf16.mxu0 %vm3805_vm1, %v3804_v14  ;;  %v3666_v23 = vld [vmem:[%s4599_s3 + $0x38] sm:$0xff]  }
0x10a1   : > { %v1702_v0 = vpack.c.bf16 %v1646_v24, %v1646_v24  ;;  %v3444_v16 = vpop.f32.mrb[49].mxu1  ;;  %3484 = vmatprep.subr.bf16.mxu0 %v3804_v14 }
0x10a2   : > { %v1649_v17 = vpop.f32.mrb[50].mxu1 }
0x10a3   : > { %v3445_v27 = vpop.f32.mrb[51].mxu1  ;;  %3467 = vmatmul.mubr.msk.bf16.vlgmr.msra.gmra.mrb[56].mxu1 %vm352_vm2, %v1702_v0 }
0x10a4   : > { %v1694_v3 = vpop.f32.mrb[40].mxu0  ;;  %3480 = vmatprep.mubr.msk.bf16.mxu1 %vm3805_vm1, %v3804_v14  ;;  %3477 = vmatpush3.bf16.msra.mxu1 %v3139_v9 }
0x10a5   : > { %v1703_v30 = vpack.c.bf16 %v1694_v3, %v1694_v3  ;;  %v3450_v31 = vpop.f32.mrb[41].mxu0  ;;  %3478 = vmatprep.subr.bf16.mxu1 %v3804_v14 }
0x10a6   : > { %v1697_v32 = vpop.f32.mrb[42].mxu0 }
0x10a7   : > { %v3451_v33 = vpop.f32.mrb[43].mxu0  ;;  %3473 = vmatmul.mubr.msk.bf16.vlgmr.msra.gmra.mrb[48].mxu0 %vm352_vm2, %v1703_v30 }
0x10a8   : > { %3492 = vmatprep.mubr.msk.bf16.mxu0 %vm3805_vm1, %v3804_v14  ;;  %3485 = vmatpush3.bf16.msra.mxu0 %v3663_v10 }
0x10a9   : > { %3486 = vmatprep.subr.bf16.mxu0 %v3804_v14 }
0x110d   : > { %v1747_v35 = vpop.f32.mrb[52].mxu1 }
0x110e   : > { %1754 = vrot.lane.b32.xlu1 %v1747_v35, %s3803_s12  ;;  %v3456_v34 = vpop.f32.mrb[53].mxu1 }
0x110f   : > { %v1750_v6 = vpop.f32.mrb[54].mxu1 }
0x1110   : > { %v3457_v5 = vpop.f32.mrb[55].mxu1 }
0x1172   : > { %v1801_v26 = vpop.f32.mrb[44].mxu0 }
0x1173   : > { %1808 = vrot.lane.b32.xlu0 %v1801_v26, %s3803_s12  ;;  %v3462_v36 = vpop.f32.mrb[45].mxu0 }
0x1174   : > { %v1804_v39 = vpop.f32.mrb[46].mxu0 }
0x1175   : > { %v3463_v40 = vpop.f32.mrb[47].mxu0 }
0x1176   : > { %v1855_v41 = vpop.f32.mrb[56].mxu1 }
0x1177   : > { %1862 = vrot.lane.b32.xlu1 %v1855_v41, %s3803_s12  ;;  %v3468_v42 = vpop.f32.mrb[57].mxu1 }
0x1178   : > { %v1858_v43 = vpop.f32.mrb[58].mxu1 }
0x1179   : > { %v3469_v44 = vpop.f32.mrb[59].mxu1  ;;  %v4354_v43 = vld [vmem:[%s4600_s4 + $0x8] sm:$0x7] }
0x117a   : > { %v1909_v45 = vpop.f32.mrb[48].mxu0  ;;  %v4358_v44 = vrot.slane %v4354_v43, %v3905_v4  ;;  %v4378_v4 = vld [vmem:[%s4598_s2 + $0x50] sm:$0xff] }
0x117b   : > { %1916 = vrot.lane.b32.xlu0 %v1909_v45, %s3803_s12  ;;  %v3474_v46 = vpop.f32.mrb[49].mxu0  ;;  %v4363_v45 = vld [vmem:[%s4598_s2 + $0x40] sm:$0xff] }
0x117c   : > { %v1912_v12 = vpop.f32.mrb[50].mxu0  ;;  %v4368_v46 = vld [vmem:[%s4598_s2 + $0x48] sm:$0xff] }
0x117d   : > { %v3475_v13 = vpop.f32.mrb[51].mxu0  ;;  %v3160_v12 = vcombine.low %v4363_v45, %v4368_v46 }
0x117e   : > { %v4383_v13 = vld [vmem:[%s4598_s2 + $0x58] sm:$0xff] }
0x1180   : > { %v1755_v47 = vpop.permute.xlu1 %1754 }
0x1181   : > { %v1757_v51 = vadd.f32 %v1755_v47, %v4185_v19  ;;  %v3161_v47 = vcombine.low %v4378_v4, %v4383_v13 }
0x11e5   : > { %v1809_v48 = vpop.permute.xlu0 %1808 }
0x11e6   : > { %v1811_v52 = vadd.f32 %v1809_v48, %v1757_v51 }
0x11e9   : > { %v1863_v37 = vpop.permute.xlu1 %1862 }
0x11ea   : > { %v1865_v38 = vadd.f32 %v1863_v37, %v1811_v52 }
0x11ed   : > { %v1917_v53 = vpop.permute.xlu0 %1916 }
0x11ee   : > { %v1919_v54 = vadd.f32 %v1917_v53, %v1865_v38 }
0x11f0   : > { %1921 = vrot.lane.b32.xlu1 %v1919_v54, %s3810_s13 }
0x1262   : > { %v1922_v55 = vpop.permute.xlu1 %1921 }
0x1263   : > { %v1924_v60 = vadd.f32 %v1922_v55, %v4136_v50  ;;  %v3140_v50 = vcombine.high %v4169_v61, %v4174_v62 }
0x1265   : > { %v1925_v63 = vsel %vm251_vm0, %v1924_v60, 0.0  ;;  %3479 = vmatpush3.bf16.msra.mxu1 %v3140_v50 }
0x1266   : > { %1926 = vadd.xlane.f32.xlu0 %v1925_v63  ;;  %3496 = vmatprep.subr.bf16.mxu1 %v3804_v14  ;;  %v4394_v63 = vrot.slane %v4354_v43, %v3957_v28 }
0x127c   : > { %1938 = vrot.lane.b32.xlu0 %v4149_v57, %s3809_s30 }
0x1280   : > { %2029 = vrot.lane.b32.xlu0 %v1950_v11, %s3809_s30 }
0x12f3   : > { %v1927_v1 = vpop.xlane.xlu0 %1926 }
0x12f4   : > { %v1928_v2 = vmul.f32 0.03125, %v1927_v1 }
0x12f6   : > { %v1929_v7 = vsub.f32 %v1924_v60, %v1928_v2 }
0x12f7   : > { %v1939_v15 = vpop.permute.xlu0 %1938 }
0x12f8   : > { %v1930_v19 = vmul.f32 %v1929_v7, %v1929_v7 }
0x12fa   : > { %v1931_v8 = vsel %vm251_vm0, %v1930_v19, 0.0 }
0x12fb   : > { %1932 = vadd.xlane.f32.xlu1 %v1931_v8  ;;  %v2030_v31 = vpop.permute.xlu0 %2029 }
0x130c   : > { %1942 = vrot.lane.b32.xlu1 %v4149_v57, %s3810_s13  ;;  %v3664_v57 = vld [vmem:[%s4599_s3 + $0x28] sm:$0xff]  }
0x130d   : > { %3487 = vmatpush3.bf16.msra.mxu0 %v3664_v57 }
0x130e   : > { %3488 = vmatprep.subr.bf16.mxu0 %v3804_v14 }
0x1311   : > { %3489 = vmatpush3.bf16.msra.mxu0 %v3665_v29 }
0x1312   : > { %3490 = vmatprep.subr.bf16.mxu0 %v3804_v14 }
0x1315   : > { %3491 = vmatpush3.bf16.msra.mxu0 %v3666_v23 }
0x1316   : > { %3510 = vmatprep.subr.bf16.mxu0 %v3804_v14 }
0x1388   : > { %v1933_v58 = vpop.xlane.xlu1 %1932 }
0x1389   : > { %v1934_v59 = vmul.f32 0.03125, %v1933_v58 }
0x138b   : > { %v1935_v61 = vadd.f32 1e-05, %v1934_v59 }
0x138c   : > { %v1943_v56 = vpop.permute.xlu1 %1942 }
0x138d   : > { %3717 = vrsqrt.f32 %v1935_v61 }
0x1397   : > { %v3718_v62 = vpop.eup %3717 }
0x1398   : > { %v1937_v18 = vmul.f32 %v3718_v62, %v1929_v7 }
0x139a   : > { %v1941_v20 = vmul.f32 %v1939_v15, %v1937_v18 }
0x139c   : > { %v1945_v21 = vadd.f32 %v1943_v56, %v1941_v20 }
0x139e   : > { %v1946_v22 = vpack.c.bf16 %v1945_v21, %v1945_v21 }
0x13a0   : > { %3481 = vmatmul.mubr.msk.bf16.vlgmr.msra.gmra.mrb[60].mxu1 %vm251_vm0, %v1946_v22 }
0x13a1   : > { %3500 = vmatprep.mubr.msk.bf16.mxu1 %vm3805_vm1, %v3804_v14  ;;  %3497 = vmatpush3.bf16.msra.mxu1 %v3160_v12 }
0x13a2   : > { %3498 = vmatprep.subr.bf16.mxu1 %v3804_v14 }
0x13a5   : > { %3499 = vmatpush3.bf16.msra.mxu1 %v3161_v47 }
0x13a6   : > { %3504 = vmatprep.subr.bf16.mxu1 %v3804_v14 }
0x1473   : > { %v1996_v24 = vpop.f32.mrb[60].mxu1 }
0x1474   : > { %v1997_v0 = vadd.f32 %v1996_v24, %v1950_v11  ;;  %v3482_v16 = vpop.f32.mrb[61].mxu1 }
0x1475   : > { %v1999_v17 = vpop.f32.mrb[62].mxu1 }
0x1476   : > { %v2002_v27 = vmax.f32 %v1997_v0, 0.0  ;;  %v3483_v3 = vpop.f32.mrb[63].mxu1 }
0x1478   : > { %v2003_v30 = vpack.c.bf16 %v2002_v27, %v2002_v27 }
0x147a   : > { %3493 = vmatmul.mubr.msk.bf16.vlgmr.msra.gmra.mrb[52].mxu0 %vm1116_vm4, %v2003_v30 }
0x147b   : > { %3512 = vmatprep.mubr.msk.bf16.mxu0 %vm3805_vm1, %v3804_v14 }
0x154d   : > { %v2069_v32 = vpop.f32.mrb[52].mxu0 }
0x154e   : > { %v2070_v33 = vadd.f32 %v2069_v32, %v2030_v31  ;;  %v3494_v35 = vpop.f32.mrb[53].mxu0 }
0x154f   : > { %v2072_v34 = vpop.f32.mrb[54].mxu0 }
0x1550   : > { %v4345_v6 = vadd.f32 %v2070_v33, %v1924_v60  ;;  %v3495_v5 = vpop.f32.mrb[55].mxu0 }
0x1552   : > { %v2092_v26 = vsel %vm251_vm0, %v4345_v6, 0.0 }
0x1553   : > { %2093 = vadd.xlane.f32.xlu1 %v2092_v26 }
0x15e0   : > { %v2094_v36 = vpop.xlane.xlu1 %2093 }
0x15e1   : > { %v2095_v39 = vmul.f32 0.03125, %v2094_v36 }
0x15e3   : > { %v2096_v40 = vsub.f32 %v4345_v6, %v2095_v39 }
0x15e5   : > { %v2097_v41 = vmul.f32 %v2096_v40, %v2096_v40 }
0x15e7   : > { %v2098_v42 = vsel %vm251_vm0, %v2097_v41, 0.0 }
0x15e8   : > { %2099 = vadd.xlane.f32.xlu0 %v2098_v42 }
0x15fe   : > { %2111 = vrot.lane.b32.xlu0 %v4358_v44, %s3803_s12 }
0x1675   : > { %v2100_v48 = vpop.xlane.xlu0 %2099 }
0x1676   : > { %v2101_v51 = vmul.f32 0.03125, %v2100_v48 }
0x1678   : > { %v2102_v37 = vadd.f32 1e-05, %v2101_v51 }
0x1679   : > { %v2112_v53 = vpop.permute.xlu0 %2111 }
0x167a   : > { %3719 = vrsqrt.f32 %v2102_v37 }
0x1684   : > { %v3720_v52 = vpop.eup %3719 }
0x1685   : > { %v2104_v38 = vmul.f32 %v3720_v52, %v2096_v40 }
0x1687   : > { %v2109_v54 = vmul.f32 %v4358_v44, %v2104_v38 }
0x1689   : > { %v2114_v55 = vadd.f32 %v2112_v53, %v2109_v54 }
0x168b   : > { %v2115_v60 = vpack.c.bf16 %v2114_v55, %v2114_v55 }
0x168d   : > { %3501 = vmatmul.mubr.msk.bf16.vlgmr.msra.gmra.mrb[64].mxu1 %vm251_vm0, %v2115_v60 }
0x168e   : > { %3506 = vmatprep.mubr.msk.bf16.mxu1 %vm3805_vm1, %v3804_v14 }
0x1760   : > { %v2169_v1 = vpop.f32.mrb[64].mxu1 }
0x1761   : > { %v2170_v2 = vadd.f32 %v2169_v1, %v4394_v63  ;;  %v3502_v7 = vpop.f32.mrb[65].mxu1 }
0x1762   : > { %v2172_v19 = vpop.f32.mrb[66].mxu1 }
0x1763   : > { %v4397_v8 = vpack.c.bf16 %v2170_v2, %v2170_v2  ;;  %v3503_v9 = vpop.f32.mrb[67].mxu1 }
0x1765   : > { %2181 = vrot.lane.b32.xlu0 %v4397_v8, %s3808_s8  ;;  %2177 = vrot.lane.b32.xlu1 %v4397_v8, %s3807_s7 }
0x1769   : > { %2179 = vrot.lane.b32.xlu1 %v4397_v8, %s3806_s6  ;;  %s3811_s6 = smov [#allocation2]  }
0x176a   : > { %s3743_s7 = sshll.u32 %s3811_s6, 4  ;;  %s3744_s7 = int_to_ptr.vmem [resolvable:$false] %s3743_s7 }
0x176b   : > { %s3745_s8 = scalar_lea.vmem %s3744_s7, 256  ;;  %p3746_p0 = scmp.lt.s32.totalorder %s4555_s16, %s3744_s7 }
0x176d   : > { %2183 = vrot.lane.b32.xlu1 %v4397_v8, %s3803_s12 }
0x17d7   : > { %v2178_v28 = vpop.permute.xlu1 %2177  ;;  %v4408_v50 = vpop.permute.xlu0 %2181 }
0x17d8   : > { %2231 = vrot.lane.b32.xlu0 %v2178_v28, %s3803_s12 }
0x17db   : > { %v4410_v10 = vpop.permute.xlu1 %2179 }
0x17dc   : > { %2327 = vrot.lane.b32.xlu0 %v4408_v50, %s3803_s12  ;;  %2279 = vrot.lane.b32.xlu1 %v4410_v10, %s3803_s12 }
0x17df   : > { %v2184_v11 = vpop.permute.xlu1 %2183 }
0x17e0   : > { %v2189_v57 = vsel %vm352_vm2, %v2184_v11, 0 }
0x17e1   : > { %3505 = vmatpush3.bf16.xpose.msra.mxu1 %v2189_v57 }
0x17e2   : > { %3516 = vmatprep.subr.bf16.mxu1 %v3804_v14 }
0x17e8   : > { %3507 = vmatmul.mubr.msk.bf16.vlgmr.msra.gmra.mrb[68].mxu1 %vm352_vm2, %v4397_v8 }
0x17e9   : > { %3518 = vmatprep.mubr.msk.bf16.mxu1 %vm3805_vm1, %v3804_v14 }
0x184a   : > { %v2232_v58 = vpop.permute.xlu0 %2231 }
0x184b   : > { %v2237_v59 = vsel %vm352_vm2, %v2232_v58, 0 }
0x184c   : > { %3511 = vmatpush3.bf16.xpose.msra.mxu0 %v2237_v59 }
0x184d   : > { %3522 = vmatprep.subr.bf16.mxu0 %v3804_v14 }
0x184e   : > { %v2280_v61 = vpop.permute.xlu1 %2279  ;;  %v2328_v15 = vpop.permute.xlu0 %2327 }
0x184f   : > { %v2285_v62 = vsel %vm352_vm2, %v2280_v61, 0  ;;  %v2333_v18 = vsel %vm352_vm2, %v2328_v15, 0  ;;  %v3171_v61 = vcombine.low %v4363_v45, %v4363_v45  ;;  %v3175_v15 = vcombine.low %v4378_v4, %v4378_v4 }
0x1850   : > { %3517 = vmatpush3.bf16.xpose.msra.mxu1 %v2285_v62  ;;  %v3173_v62 = vcombine.low %v4368_v46, %v4368_v46 }
0x1851   : > { %3528 = vmatprep.subr.bf16.mxu1 %v3804_v14 }
0x1853   : > { %3513 = vmatmul.mubr.msk.bf16.vlgmr.msra.gmra.mrb[56].mxu0 %vm352_vm2, %v2178_v28 }
0x1854   : > { %3523 = vmatpush3.bf16.xpose.msra.mxu0 %v2333_v18  ;;  %3524 = vmatprep.mubr.msk.bf16.mxu0 %vm3805_vm1, %v3804_v14 }
0x1855   : > { %3534 = vmatprep.subr.bf16.mxu0 %v3804_v14 }
0x1857   : > { %3519 = vmatmul.mubr.msk.bf16.vlgmr.msra.gmra.mrb[72].mxu1 %vm352_vm2, %v4410_v10 }
0x1858   : > { %3530 = vmatprep.mubr.msk.bf16.mxu1 %vm3805_vm1, %v3804_v14 }
0x185b   : > { %3525 = vmatmul.mubr.msk.bf16.vlgmr.msra.gmra.mrb[60].mxu0 %vm352_vm2, %v4408_v50 }
0x185c   : > { %3536 = vmatprep.mubr.msk.bf16.mxu0 %vm3805_vm1, %v3804_v14 }
0x18bb   : > { %v2225_v56 = vpop.f32.mrb[68].mxu1 }
0x18bc   : > { %v2226_v20 = vadd.f32 %v2225_v56, %v4015_v49  ;;  %v3508_v21 = vpop.f32.mrb[69].mxu1 }
0x18bd   : > { %v2228_v22 = vpop.f32.mrb[70].mxu1 }
0x18be   : > { %v3509_v29 = vpop.f32.mrb[71].mxu1  ;;  %v2375_v23 = vsel %vm352_vm2, %v2226_v20, -inf }
0x18bf   : > { %2376 = vmax.xlane.f32.xlu1 %v2375_v23 }
0x1926   : > { %v2273_v24 = vpop.f32.mrb[56].mxu0 }
0x1927   : > { %v2274_v0 = vadd.f32 %v2273_v24, %v4015_v49  ;;  %v3514_v16 = vpop.f32.mrb[57].mxu0 }
0x1928   : > { %v2276_v17 = vpop.f32.mrb[58].mxu0 }
0x1929   : > { %v3515_v27 = vpop.f32.mrb[59].mxu0  ;;  %v2378_v3 = vsel %vm352_vm2, %v2274_v0, -inf }
0x192a   : > { %2379 = vmax.xlane.f32.xlu0 %v2378_v3  ;;  %v2321_v30 = vpop.f32.mrb[72].mxu1 }
0x192b   : > { %v2322_v31 = vadd.f32 %v2321_v30, %v4015_v49  ;;  %v3520_v32 = vpop.f32.mrb[73].mxu1 }
0x192c   : > { %v2324_v33 = vpop.f32.mrb[74].mxu1 }
0x192d   : > { %v3521_v35 = vpop.f32.mrb[75].mxu1  ;;  %v2381_v34 = vsel %vm352_vm2, %v2322_v31, -inf }
0x192e   : > { %v2369_v5 = vpop.f32.mrb[60].mxu0  ;;  %2382 = vmax.xlane.f32.xlu0 %v2381_v34 }
0x192f   : > { %v2370_v26 = vadd.f32 %v2369_v5, %v4015_v49  ;;  %v3526_v36 = vpop.f32.mrb[61].mxu0 }
0x1930   : > { %v2372_v39 = vpop.f32.mrb[62].mxu0 }
0x1931   : > { %v3527_v40 = vpop.f32.mrb[63].mxu0  ;;  %v2384_v41 = vsel %vm352_vm2, %v2370_v26, -inf }
0x1932   : > { %2385 = vmax.xlane.f32.xlu1 %v2384_v41 }
0x1943   : > { %2471 = vrot.lane.b32.xlu1 %v2178_v28, %s3809_s30 }
0x1944   : > { %2423 = vrot.lane.b32.xlu0 %v4397_v8, %s3809_s30 }
0x194c   : > { %v2377_v42 = vpop.xlane.xlu1 %2376 }
0x194d   : > { %v2387_v12 = vsub.f32 %v2226_v20, %v2377_v42 }
0x194f   : > { %v2391_v47 = vmul.f32 1.442695, %v2387_v12 }
0x1951   : > { %3721 = vpow2.f32 %v2391_v47 }
0x195b   : > { %v3722_v48 = vpop.eup %3721 }
0x195c   : > { %v2399_v51 = vsel %vm352_vm2, %v3722_v48, 0.0 }
0x1963   : > { %2400 = vadd.xlane.f32.xlu0 %v2399_v51 }
0x19b7   : > { %v2380_v49 = vpop.xlane.xlu0 %2379 }
0x19b8   : > { %v2388_v37 = vsub.f32 %v2274_v0, %v2380_v49 }
0x19ba   : > { %v2393_v52 = vmul.f32 1.442695, %v2388_v37 }
0x19bb   : > { %v2383_v38 = vpop.xlane.xlu0 %2382 }
0x19bc   : > { %3723 = vpow2.f32 %v2393_v52  ;;  %v2389_v53 = vsub.f32 %v2322_v31, %v2383_v38 }
0x19be   : > { %v2395_v54 = vmul.f32 1.442695, %v2389_v53 }
0x19bf   : > { %v2386_v55 = vpop.xlane.xlu1 %2385  ;;  %v2424_v60 = vpop.permute.xlu0 %2423 }
0x19c0   : > { %3725 = vpow2.f32 %v2395_v54  ;;  %v2390_v1 = vsub.f32 %v2370_v26, %v2386_v55  ;;  %v2429_v2 = vsel %vm596_vm3, %v2424_v60, 0 }
0x19c1   : > { %3529 = vmatpush3.bf16.msra.mxu1 %v2429_v2 }
0x19c2   : > { %v2397_v7 = vmul.f32 1.442695, %v2390_v1  ;;  %3540 = vmatprep.subr.bf16.mxu1 %v3804_v14 }
0x19c3   : > { %v2472_v19 = vpop.permute.xlu1 %2471 }
0x19c4   : > { %3727 = vpow2.f32 %v2397_v7  ;;  %v2477_v8 = vsel %vm596_vm3, %v2472_v19, 0 }
0x19c5   : > { %3535 = vmatpush3.bf16.msra.mxu0 %v2477_v8 }
0x19c6   : > { %v3724_v9 = vpop.eup %3723  ;;  %3546 = vmatprep.subr.bf16.mxu0 %v3804_v14 }
0x19c7   : > { %v2402_v28 = vsel %vm352_vm2, %v3724_v9, 0.0 }
0x19c8   : > { %2403 = vadd.xlane.f32.xlu1 %v2402_v28 }
0x19ca   : > { %v3726_v11 = vpop.eup %3725 }
0x19cb   : > { %v2405_v57 = vsel %vm352_vm2, %v3726_v11, 0.0 }
0x19cc   : > { %2406 = vadd.xlane.f32.xlu0 %v2405_v57 }
0x19ce   : > { %v3728_v58 = vpop.eup %3727 }
0x19cf   : > { %v2408_v59 = vsel %vm352_vm2, %v3728_v58, 0.0 }
0x19d0   : > { %2409 = vadd.xlane.f32.xlu1 %v2408_v59 }
0x19e1   : > { %2519 = vrot.lane.b32.xlu1 %v4410_v10, %s3809_s30  ;;  %v3177_v10 = vcombine.low %v4383_v13, %v4383_v13 }
0x19e2   : > { %2567 = vrot.lane.b32.xlu0 %v4408_v50, %s3809_s30 }
0x19e5   : > { %2620 = vrot.lane.b32.xlu1 %v3171_v61, %s3810_s13 }
0x19e6   : > { %2674 = vrot.lane.b32.xlu0 %v3173_v62, %s3810_s13 }
0x19e9   : > { %2728 = vrot.lane.b32.xlu1 %v3175_v15, %s3810_s13 }
0x19ea   : > { %2782 = vrot.lane.b32.xlu0 %v3177_v10, %s3810_s13 }
0x19f0   : > { %v2401_v18 = vpop.xlane.xlu0 %2400 }
0x19f1   : > { %3729 = vrcp.f32 %v2401_v18 }
0x19fb   : > { %v3730_v50 = vpop.eup %3729 }
0x19fc   : > { %v2415_v56 = vmul.f32 %v3730_v50, %v3722_v48 }
0x19fe   : > { %v2419_v20 = vpack.c.bf16 %v2415_v56, %v2415_v56 }
0x1a00   : > { %3531 = vmatmul.mubr.msk.bf16.vlgmr.msra.gmra.mrb[76].mxu1 %vm352_vm2, %v2419_v20 }
0x1a01   : > { %3542 = vmatprep.mubr.msk.bf16.mxu1 %vm3805_vm1, %v3804_v14 }
0x1a55   : > { %v2404_v21 = vpop.xlane.xlu1 %2403 }
0x1a56   : > { %3731 = vrcp.f32 %v2404_v21 }
0x1a59   : > { %v2407_v22 = vpop.xlane.xlu0 %2406 }
0x1a5a   : > { %3733 = vrcp.f32 %v2407_v22 }
0x1a5d   : > { %v2410_v29 = vpop.xlane.xlu1 %2409  ;;  %v2568_v16 = vpop.permute.xlu0 %2567 }
0x1a5e   : > { %3735 = vrcp.f32 %v2410_v29  ;;  %v2573_v31 = vsel %vm596_vm3, %v2568_v16, 0 }
0x1a60   : > { %v3732_v23 = vpop.eup %3731 }
0x1a61   : > { %v2416_v24 = vmul.f32 %v3732_v23, %v3724_v9  ;;  %v2520_v0 = vpop.permute.xlu1 %2519  ;;  %v2675_v5 = vpop.permute.xlu0 %2674 }
0x1a62   : > { %v2525_v17 = vsel %vm596_vm3, %v2520_v0, 0  ;;  %v2680_v39 = vsel %vm596_vm3, %v2675_v5, 0 }
0x1a63   : > { %3541 = vmatpush3.bf16.msra.mxu1 %v2525_v17  ;;  %v2420_v27 = vpack.c.bf16 %v2416_v24, %v2416_v24 }
0x1a64   : > { %v3734_v3 = vpop.eup %3733  ;;  %3552 = vmatprep.subr.bf16.mxu1 %v3804_v14 }
0x1a65   : > { %v2417_v30 = vmul.f32 %v3734_v3, %v3726_v11  ;;  %3537 = vmatmul.mubr.msk.bf16.vlgmr.msra.gmra.mrb[64].mxu0 %vm352_vm2, %v2420_v27  ;;  %v2621_v32 = vpop.permute.xlu1 %2620  ;;  %v2783_v49 = vpop.permute.xlu0 %2782 }
0x1a66   : > { %3547 = vmatpush3.bf16.msra.mxu0 %v2573_v31  ;;  %3548 = vmatprep.mubr.msk.bf16.mxu0 %vm3805_vm1, %v3804_v14  ;;  %v2626_v35 = vsel %vm596_vm3, %v2621_v32, 0  ;;  %v2788_v53 = vsel %vm596_vm3, %v2783_v49, 0 }
0x1a67   : > { %v2421_v33 = vpack.c.bf16 %v2417_v30, %v2417_v30  ;;  %3558 = vmatprep.subr.bf16.mxu0 %v3804_v14 }
0x1a68   : > { %v3736_v34 = vpop.eup %3735 }
0x1a69   : > { %v2418_v26 = vmul.f32 %v3736_v34, %v3728_v58  ;;  %3543 = vmatmul.mubr.msk.bf16.vlgmr.msra.gmra.mrb[80].mxu1 %vm352_vm2, %v2421_v33  ;;  %v2729_v40 = vpop.permute.xlu1 %2728 }
0x1a6a   : > { %3553 = vmatpush3.bf16.msra.mxu1 %v2626_v35  ;;  %3554 = vmatprep.mubr.msk.bf16.mxu1 %vm3805_vm1, %v3804_v14  ;;  %v2734_v47 = vsel %vm596_vm3, %v2729_v40, 0 }
0x1a6b   : > { %v2422_v36 = vpack.c.bf16 %v2418_v26, %v2418_v26  ;;  %3564 = vmatprep.subr.bf16.mxu1 %v3804_v14 }
0x1a6d   : > { %3549 = vmatmul.mubr.msk.bf16.vlgmr.msra.gmra.mrb[68].mxu0 %vm352_vm2, %v2422_v36 }
0x1a6e   : > { %3559 = vmatpush3.bf16.msra.mxu0 %v2680_v39  ;;  %3560 = vmatprep.mubr.msk.bf16.mxu0 %vm3805_vm1, %v3804_v14 }
0x1a6f   : > { %3570 = vmatprep.subr.bf16.mxu0 %v3804_v14 }
0x1ad3   : > { %v2465_v41 = vpop.f32.mrb[76].mxu1 }
0x1ad4   : > { %v2615_v42 = vpack.c.bf16 %v2465_v41, %v2465_v41  ;;  %v3532_v12 = vpop.f32.mrb[77].mxu1  ;;  %v3179_v41 = vcombine.high %v4363_v45, %v4368_v46 }
0x1ad5   : > { %v2468_v48 = vpop.f32.mrb[78].mxu1  ;;  %v2865_v12 = vrot.slane %v4354_v43, %v4112_v25 }
0x1ad6   : > { %v3533_v51 = vpop.f32.mrb[79].mxu1  ;;  %3555 = vmatmul.mubr.msk.bf16.vlgmr.msra.gmra.mrb[84].mxu1 %vm352_vm2, %v2615_v42  ;;  %v3675_v42 = vld [vmem:[%s4599_s3 + $0x40] sm:$0xff]  }
0x1ad7   : > { %3565 = vmatpush3.bf16.msra.mxu1 %v2734_v47  ;;  %3566 = vmatprep.mubr.msk.bf16.mxu1 %vm3805_vm1, %v3804_v14 }
0x1ad8   : > { %3576 = vmatprep.subr.bf16.mxu1 %v3804_v14 }
0x1b38   : > { %v2513_v37 = vpop.f32.mrb[64].mxu0 }
0x1b39   : > { %v2616_v52 = vpack.c.bf16 %v2513_v37, %v2513_v37  ;;  %v3538_v38 = vpop.f32.mrb[65].mxu0  ;;  %v3677_v37 = vld [vmem:[%s4599_s3 + $0x50] sm:$0xff]  }
0x1b3a   : > { %v2516_v54 = vpop.f32.mrb[66].mxu0 }
0x1b3b   : > { %v3539_v55 = vpop.f32.mrb[67].mxu0  ;;  %3561 = vmatmul.mubr.msk.bf16.vlgmr.msra.gmra.mrb[72].mxu0 %vm352_vm2, %v2616_v52  ;;  %v3678_v52 = vld [vmem:[%s4599_s3 + $0x58] sm:$0xff]  }
0x1b3c   : > { %v2561_v60 = vpop.f32.mrb[80].mxu1  ;;  %3571 = vmatpush3.bf16.msra.mxu0 %v2788_v53  ;;  %3572 = vmatprep.mubr.msk.bf16.mxu0 %vm3805_vm1, %v3804_v14 }
0x1b3d   : > { %v2617_v1 = vpack.c.bf16 %v2561_v60, %v2561_v60  ;;  %v3544_v2 = vpop.f32.mrb[81].mxu1  ;;  %3584 = vmatprep.subr.bf16.mxu0 %v3804_v14 }
0x1b3e   : > { %v2564_v7 = vpop.f32.mrb[82].mxu1 }
0x1b3f   : > { %v3545_v19 = vpop.f32.mrb[83].mxu1  ;;  %3567 = vmatmul.mubr.msk.bf16.vlgmr.msra.gmra.mrb[88].mxu1 %vm352_vm2, %v2617_v1 }
0x1b40   : > { %v2609_v8 = vpop.f32.mrb[68].mxu0  ;;  %3580 = vmatprep.mubr.msk.bf16.mxu1 %vm3805_vm1, %v3804_v14  ;;  %3577 = vmatpush3.bf16.msra.mxu1 %v3179_v41 }
0x1b41   : > { %v2618_v9 = vpack.c.bf16 %v2609_v8, %v2609_v8  ;;  %v3550_v28 = vpop.f32.mrb[69].mxu0  ;;  %3578 = vmatprep.subr.bf16.mxu1 %v3804_v14 }
0x1b42   : > { %v2612_v11 = vpop.f32.mrb[70].mxu0 }
0x1b43   : > { %v3551_v57 = vpop.f32.mrb[71].mxu0  ;;  %3573 = vmatmul.mubr.msk.bf16.vlgmr.msra.gmra.mrb[76].mxu0 %vm352_vm2, %v2618_v9 }
0x1b44   : > { %3592 = vmatprep.mubr.msk.bf16.mxu0 %vm3805_vm1, %v3804_v14  ;;  %3585 = vmatpush3.bf16.msra.mxu0 %v3675_v42 }
0x1b45   : > { %3586 = vmatprep.subr.bf16.mxu0 %v3804_v14 }
0x1ba9   : > { %v2662_v58 = vpop.f32.mrb[84].mxu1 }
0x1baa   : > { %2669 = vrot.lane.b32.xlu1 %v2662_v58, %s3803_s12  ;;  %v3556_v59 = vpop.f32.mrb[85].mxu1 }
0x1bab   : > { %v2665_v61 = vpop.f32.mrb[86].mxu1 }
0x1bac   : > { %v3557_v62 = vpop.f32.mrb[87].mxu1 }
0x1c0e   : > { %v2716_v15 = vpop.f32.mrb[72].mxu0 }
0x1c0f   : > { %2723 = vrot.lane.b32.xlu0 %v2716_v15, %s3803_s12  ;;  %v3562_v10 = vpop.f32.mrb[73].mxu0 }
0x1c10   : > { %v2719_v18 = vpop.f32.mrb[74].mxu0 }
0x1c11   : > { %v3563_v50 = vpop.f32.mrb[75].mxu0 }
0x1c12   : > { %v2770_v56 = vpop.f32.mrb[88].mxu1 }
0x1c13   : > { %2777 = vrot.lane.b32.xlu1 %v2770_v56, %s3803_s12  ;;  %v3568_v20 = vpop.f32.mrb[89].mxu1 }
0x1c14   : > { %v2773_v21 = vpop.f32.mrb[90].mxu1 }
0x1c15   : > { %v3569_v22 = vpop.f32.mrb[91].mxu1 }
0x1c16   : > { %v2824_v29 = vpop.f32.mrb[76].mxu0 }
0x1c17   : > { %2831 = vrot.lane.b32.xlu0 %v2824_v29, %s3803_s12  ;;  %v3574_v23 = vpop.f32.mrb[77].mxu0  ;;  %s3739_s12 = scalar_lea.vmem %s4555_s16, 128 }
0x1c18   : > { %v2827_v24 = vpop.f32.mrb[78].mxu0  ;;  %p3740_p11 = scmp.ne.s32.totalorder %s4555_s16, %s3739_s12  ;;  %p3747_p1 = scmp.lt.s32.totalorder %s3745_s8, %s3739_s12 }
0x1c19   : > { %v3575_v0 = vpop.f32.mrb[79].mxu0 }
0x1c1a   : > { %p3741_p12 = pnand %p3740_p11, %p3880_p5  ;;  %p3748_p2 = por %p3747_p1, %p3746_p0 }
0x1c1c   : > { %v2670_v16 = vpop.permute.xlu1 %2669  ;;  %p3742_p13 = pneg %p3741_p12 }
0x1c1d   : > { %v2672_v27 = vadd.f32 %v2670_v16, %v4394_v63 }
0x1c1e   : > { %p3749_p3 = pnand %p3748_p2, %p3742_p13 }
0x1c81   : > { %v2724_v17 = vpop.permute.xlu0 %2723 }
0x1c82   : > { %v2726_v30 = vadd.f32 %v2724_v17, %v2672_v27 }
0x1c85   : > { %v2778_v3 = vpop.permute.xlu1 %2777 }
0x1c86   : > { %v2780_v31 = vadd.f32 %v2778_v3, %v2726_v30 }
0x1c89   : > { %v2832_v32 = vpop.permute.xlu0 %2831 }
0x1c8a   : > { %v2834_v33 = vadd.f32 %v2832_v32, %v2780_v31 }
0x1c8c   : > { %2836 = vrot.lane.b32.xlu1 %v2834_v33, %s3810_s13 }
0x1cfe   : > { %v2837_v35 = vpop.permute.xlu1 %2836 }
0x1cff   : > { %v2839_v34 = vadd.f32 %v2837_v35, %v4345_v6  ;;  %v3180_v6 = vcombine.high %v4378_v4, %v4383_v13 }
0x1d01   : > { %v2840_v5 = vsel %vm251_vm0, %v2839_v34, 0.0  ;;  %3579 = vmatpush3.bf16.msra.mxu1 %v3180_v6 }
0x1d02   : > { %2841 = vadd.xlane.f32.xlu0 %v2840_v5 }
0x1d18   : > { %2853 = vrot.lane.b32.xlu0 %v4358_v44, %s3809_s30 }
0x1d1c   : > { %2944 = vrot.lane.b32.xlu0 %v2865_v12, %s3809_s30 }
0x1d8f   : > { %v2842_v26 = vpop.xlane.xlu0 %2841 }
0x1d90   : > { %v2843_v36 = vmul.f32 0.03125, %v2842_v26 }
0x1d92   : > { %v2844_v39 = vsub.f32 %v2839_v34, %v2843_v36 }
0x1d93   : > { %v2854_v47 = vpop.permute.xlu0 %2853 }
0x1d94   : > { %v2845_v63 = vmul.f32 %v2844_v39, %v2844_v39 }
0x1d96   : > { %v2846_v40 = vsel %vm251_vm0, %v2845_v63, 0.0 }
0x1d97   : > { %2847 = vadd.xlane.f32.xlu1 %v2846_v40  ;;  %v2945_v7 = vpop.permute.xlu0 %2944 }
0x1da8   : > { %2857 = vrot.lane.b32.xlu1 %v4358_v44, %s3810_s13  ;;  %v3676_v44 = vld [vmem:[%s4599_s3 + $0x48] sm:$0xff]  }
0x1da9   : > { %3587 = vmatpush3.bf16.msra.mxu0 %v3676_v44 }
0x1daa   : > { %3588 = vmatprep.subr.bf16.mxu0 %v3804_v14 }
0x1dad   : > { %3589 = vmatpush3.bf16.msra.mxu0 %v3677_v37 }
0x1dae   : > { %3590 = vmatprep.subr.bf16.mxu0 %v3804_v14 }
0x1db1   : > { %3591 = vmatpush3.bf16.msra.mxu0 %v3678_v52 }
0x1e24   : > { %v2848_v45 = vpop.xlane.xlu1 %2847 }
0x1e25   : > { %v2849_v46 = vmul.f32 0.03125, %v2848_v45 }
0x1e27   : > { %v2850_v4 = vadd.f32 1e-05, %v2849_v46 }
0x1e28   : > { %v2858_v25 = vpop.permute.xlu1 %2857 }
0x1e29   : > { %3737 = vrsqrt.f32 %v2850_v4 }
0x1e33   : > { %v3738_v13 = vpop.eup %3737 }
0x1e34   : > { %v2852_v48 = vmul.f32 %v3738_v13, %v2844_v39 }
0x1e36   : > { %v2856_v43 = vmul.f32 %v2854_v47, %v2852_v48 }
0x1e38   : > { %v2860_v51 = vadd.f32 %v2858_v25, %v2856_v43 }
0x1e3a   : > { %v2861_v49 = vpack.c.bf16 %v2860_v51, %v2860_v51 }
0x1e3c   : > { %3581 = vmatmul.mubr.msk.bf16.vlgmr.msra.gmra.mrb[92].mxu1 %vm251_vm0, %v2861_v49 }
0x1f0f   : > { %v2911_v38 = vpop.f32.mrb[92].mxu1 }
0x1f10   : > { %v2912_v53 = vadd.f32 %v2911_v38, %v2865_v12  ;;  %v3582_v54 = vpop.f32.mrb[93].mxu1 }
0x1f11   : > { %v2914_v55 = vpop.f32.mrb[94].mxu1 }
0x1f12   : > { %v2917_v60 = vmax.f32 %v2912_v53, 0.0  ;;  %v3583_v1 = vpop.f32.mrb[95].mxu1 }
0x1f14   : > { %v2918_v2 = vpack.c.bf16 %v2917_v60, %v2917_v60 }
0x1f16   : > { %3593 = vmatmul.mubr.msk.bf16.vlgmr.msra.gmra.mrb[80].mxu0 %vm1116_vm4, %v2918_v2 }
0x1fe9   : > { %v2984_v19 = vpop.f32.mrb[80].mxu0 }
0x1fea   : > { %v2985_v14 = vadd.f32 %v2984_v19, %v2945_v7  ;;  %v3594_v8 = vpop.f32.mrb[81].mxu0 }
0x1feb   : > { %v2987_v9 = vpop.f32.mrb[82].mxu0 }
0x1fec   : > { %v2990_v28 = vadd.f32 %v2985_v14, %v2839_v34  ;;  %v3595_v11 = vpop.f32.mrb[83].mxu0 }
0x1fee   : > { %2991 = vst.msk [vmem:[%s226_s15] sm:$0xff] %vm251_vm0, %v2990_v28 }
0x1fef   : > { %3752 = shalt.err (!%p3749_p3)
}
0x1ff0   : > { %s3753_s30 = scalar_lea.hbm %s4553_s25, 128  ;;  %s3757_s9 = scalar_lea.hbm %s4601_s5, 256 }
0x1ff1   : > { %p3754_p4 = scmp.ne.s32.totalorder %s4553_s25, %s3753_s30  ;;  %p3758_p9 = scmp.lt.u32.totalorder %s4553_s25, %s4601_s5 }
0x1ff2   : > { %p3759_p10 = scmp.lt.u32.totalorder %s3757_s9, %s3753_s30  ;;  %p3761_p12 = scmp.lt.u32.totalorder %s3753_s30, %s4553_s25 }
0x1ff3   : > { %p3755_p7 = pnand %p3754_p4, %p3880_p5 }
0x1ff4   : > { %p3760_p11 = por %p3759_p10, %p3758_p9 }
0x1ff5   : > { %p3756_p8 = pneg %p3755_p7 }
0x1ff6   : > { %p3762_p13 = por %p3761_p12, %p3760_p11 }
0x1ff8   : > { %p3763_p0 = pnand %p3762_p13, %p3756_p8 }
0x1ffa   : > { %3766 = shalt.err (!%p3763_p0)
}
0x1ffb   : > { %3596 = dma.vmem_to_hbm [thread:$0]  (%p3880_p5), %s4555_s16, 128, %s4553_s25, %s2993_s22  }
0x1ffc PF: > { %p3602_p1 = scmp.ge.s32.totalorder %s3801_s21, 2  ;;  %s3018_s14 = sand.u32 1, %s3789_s18  }
0x1ffd   : > { %s3019_s15 = scalar_lea.sflag [#allocation3], %s3018_s14 }
0x1ffe   : > { %p3599_p2 = pnand %p3602_p1, %p3884_p6 }
0x2000   : > { %3784 = dma.done.wait (!%p3599_p2), %s3019_s15, 128  }
0x2001   : > { %3786 = vsyncadd (!%p3599_p2), %s3019_s15, 4294967168  ;;  %p15_p3 = scmp.ge.s32.totalorder %s3867_s24, 4   ;;  %s4604_s18 = smov %s3793_s19 }
0x2002   : > { %s4605_s19 = smov %s3797_s20  ;;  %s4606_s20 = smov %s3878_s27 }
0x2003   : > { %s4607_s21 = smov %s3867_s24  ;;  %17 = sbr.rel (!%p15_p3) target bundleno = 3 (0x3), region = 84 }
0x200a   :  { %3024 = vsyncpa [#allocation3], 1 }
0x200b   :  { %3026 = vsyncpa [#allocation3 + $0x1], 1 }

</bundles_post_ra>
